<compile_context>
chip_gen: v5e
topology: v5e:2x2
jax: 0.10.0
libtpu: 0.0.40
codegen_flags: <defaults>
</compile_context>

<pallas_src>
import functools
import math

import jax
import jax.numpy as jnp
import numpy as np
from jax.experimental import pallas as pl
from jax.experimental.pallas import tpu as pltpu

LN_EPS = 1e-5  # PyTorch nn.LayerNorm default


# ----------------------------------------------------------------------------
# In-kernel helpers (operate on jnp values, not refs)
# ----------------------------------------------------------------------------

def _layernorm_f32(y, gamma, beta, eps):
    """y: (S, F) f32; gamma/beta: (1, F)."""
    mean = jnp.mean(y, axis=-1, keepdims=True)
    var = jnp.mean(jnp.square(y - mean), axis=-1, keepdims=True)
    yn = (y - mean) * jax.lax.rsqrt(var + eps)
    return yn * gamma.astype(jnp.float32) + beta.astype(jnp.float32)


def _attn_proj_resid_ln(q, k, v, x_res, wo, bo, ln_g, ln_b, *, num_heads, causal, eps):
    """Multi-head attention + output projection + residual + LayerNorm.

    q: (Sq, F) f32, k/v: (Skv, F) f32, x_res: (Sq, F) bf16,
    wo: (F, F) bf16, bo/ln_g/ln_b: (1, F).  Returns (Sq, F) f32.
    """
    Sq, F = q.shape
    Dh = F // num_heads
    scale = 1.0 / math.sqrt(Dh)

    qb = q.astype(jnp.bfloat16)
    kb = k.astype(jnp.bfloat16)
    vb = v.astype(jnp.bfloat16)

    head_outs = []
    for h in range(num_heads):  # static unroll; heads live in the lane dimension
        lo, hi = h * Dh, (h + 1) * Dh
        qh = qb[:, lo:hi]
        kh = kb[:, lo:hi]
        vh = vb[:, lo:hi]
        # Contract last dims of both operands -> q @ k^T without an XLU transpose.
        s = jax.lax.dot_general(
            qh, kh, (((1,), (1,)), ((), ())),
            preferred_element_type=jnp.float32) * scale            # (Sq, Skv)
        if causal:
            row = jax.lax.broadcasted_iota(jnp.int32, s.shape, 0)
            col = jax.lax.broadcasted_iota(jnp.int32, s.shape, 1)
            s = jnp.where(col <= row, s, -1e30)  # finite large-negative, NaN-safe
        m = jnp.max(s, axis=-1, keepdims=True)
        p = jnp.exp(s - m)
        l = jnp.sum(p, axis=-1, keepdims=True)
        p = p * pl.reciprocal(l, approx=True)                       # EUP, not VPU divide
        head_outs.append(
            jnp.dot(p.astype(jnp.bfloat16), vh,
                    preferred_element_type=jnp.float32))            # (Sq, Dh)

    attn = jnp.concatenate(head_outs, axis=-1)                      # (Sq, F) f32
    proj = jnp.dot(attn.astype(jnp.bfloat16), wo,
                   preferred_element_type=jnp.float32)
    proj = proj + bo.astype(jnp.float32)
    y = x_res.astype(jnp.float32) + proj                            # residual
    return _layernorm_f32(y, ln_g, ln_b, eps)


# ----------------------------------------------------------------------------
# Fused Pallas kernels (one grid step per batch element)
# ----------------------------------------------------------------------------

def _self_attn_block_kernel(x_ref, wqkv_ref, bqkv_ref, wo_ref, bo_ref,
                            g_ref, b_ref, o_ref, *, num_heads, eps):
    x = x_ref[0]                                                    # (S, F) bf16
    F = x.shape[-1]
    qkv = jnp.dot(x, wqkv_ref[...], preferred_element_type=jnp.float32)
    qkv = qkv + bqkv_ref[...].astype(jnp.float32)                   # (S, 3F)
    q, k, v = qkv[:, :F], qkv[:, F:2 * F], qkv[:, 2 * F:]
    out = _attn_proj_resid_ln(q, k, v, x, wo_ref[...], bo_ref[...],
                              g_ref[...], b_ref[...],
                              num_heads=num_heads, causal=True, eps=eps)
    o_ref[0] = out.astype(o_ref.dtype)


def _cross_attn_block_kernel(x_ref, enc_ref, wq_ref, bq_ref, wkv_ref, bkv_ref,
                             wo_ref, bo_ref, g_ref, b_ref, o_ref,
                             *, num_heads, eps):
    x = x_ref[0]                                                    # (S, F)  bf16
    e = enc_ref[0]                                                  # (Skv, F) bf16
    F = x.shape[-1]
    q = jnp.dot(x, wq_ref[...], preferred_element_type=jnp.float32)
    q = q + bq_ref[...].astype(jnp.float32)
    kv = jnp.dot(e, wkv_ref[...], preferred_element_type=jnp.float32)
    kv = kv + bkv_ref[...].astype(jnp.float32)                      # (Skv, 2F)
    k, v = kv[:, :F], kv[:, F:]
    out = _attn_proj_resid_ln(q, k, v, x, wo_ref[...], bo_ref[...],
                              g_ref[...], b_ref[...],
                              num_heads=num_heads, causal=False, eps=eps)
    o_ref[0] = out.astype(o_ref.dtype)


def _ffn_block_kernel(x_ref, w1_ref, b1_ref, w2_ref, b2_ref, g_ref, b_ref, o_ref,
                      *, eps):
    x = x_ref[0]                                                    # (S, F) bf16
    h = jnp.dot(x, w1_ref[...], preferred_element_type=jnp.float32)
    h = jnp.maximum(h + b1_ref[...].astype(jnp.float32), 0.0)       # (S, dff)
    f = jnp.dot(h.astype(jnp.bfloat16), w2_ref[...],
                preferred_element_type=jnp.float32)
    f = f + b2_ref[...].astype(jnp.float32)                         # (S, F)
    y = x.astype(jnp.float32) + f                                   # residual
    o_ref[0] = _layernorm_f32(y, g_ref[...], b_ref[...], eps).astype(o_ref.dtype)


def _linear_softmax_kernel(x_ref, w_ref, b_ref, o_ref):
    x = x_ref[0]                                                    # (S, F) bf16
    logits = jnp.dot(x, w_ref[...], preferred_element_type=jnp.float32)
    logits = logits + b_ref[...].astype(jnp.float32)
    m = jnp.max(logits, axis=-1, keepdims=True)
    p = jnp.exp(logits - m)
    # exact divide here so output rows sum to 1 to f32 precision
    o_ref[0] = (p / jnp.sum(p, axis=-1, keepdims=True)).astype(o_ref.dtype)


# ----------------------------------------------------------------------------
# pallas_call wrappers
# ----------------------------------------------------------------------------

_PARALLEL_1D = pltpu.CompilerParams(dimension_semantics=("parallel",))


def _act_spec(S, F):
    return pl.BlockSpec((1, S, F), lambda b: (b, 0, 0))


def _full_spec(r, c):
    return pl.BlockSpec((r, c), lambda b: (0, 0))


def self_attn_block(x, p, num_heads, eps=LN_EPS):
    B, S, F = x.shape
    return pl.pallas_call(
        functools.partial(_self_attn_block_kernel, num_heads=num_heads, eps=eps),
        grid=(B,),
        in_specs=[
            _act_spec(S, F),
            _full_spec(F, 3 * F), _full_spec(1, 3 * F),
            _full_spec(F, F), _full_spec(1, F),
            _full_spec(1, F), _full_spec(1, F),
        ],
        out_specs=_act_spec(S, F),
        out_shape=jax.ShapeDtypeStruct((B, S, F), x.dtype),
        compiler_params=_PARALLEL_1D,
    )(x, p["wqkv"], p["bqkv"], p["wo_s"], p["bo_s"], p["ln1_g"], p["ln1_b"])


def cross_attn_block(x, encoded, p, num_heads, eps=LN_EPS):
    B, S, F = x.shape
    Skv = encoded.shape[1]
    return pl.pallas_call(
        functools.partial(_cross_attn_block_kernel, num_heads=num_heads, eps=eps),
        grid=(B,),
        in_specs=[
            _act_spec(S, F),
            _act_spec(Skv, F),
            _full_spec(F, F), _full_spec(1, F),
            _full_spec(F, 2 * F), _full_spec(1, 2 * F),
            _full_spec(F, F), _full_spec(1, F),
            _full_spec(1, F), _full_spec(1, F),
        ],
        out_specs=_act_spec(S, F),
        out_shape=jax.ShapeDtypeStruct((B, S, F), x.dtype),
        compiler_params=_PARALLEL_1D,
    )(x, encoded, p["wq_c"], p["bq_c"], p["wkv_c"], p["bkv_c"],
      p["wo_c"], p["bo_c"], p["ln2_g"], p["ln2_b"])


def ffn_block(x, p, eps=LN_EPS):
    B, S, F = x.shape
    dff = p["ff_w1"].shape[1]
    return pl.pallas_call(
        functools.partial(_ffn_block_kernel, eps=eps),
        grid=(B,),
        in_specs=[
            _act_spec(S, F),
            _full_spec(F, dff), _full_spec(1, dff),
            _full_spec(dff, F), _full_spec(1, F),
            _full_spec(1, F), _full_spec(1, F),
        ],
        out_specs=_act_spec(S, F),
        out_shape=jax.ShapeDtypeStruct((B, S, F), x.dtype),
        compiler_params=_PARALLEL_1D,
    )(x, p["ff_w1"], p["ff_b1"], p["ff_w2"], p["ff_b2"], p["ln3_g"], p["ln3_b"])


def linear_softmax(x, w, b):
    B, S, F = x.shape
    N = w.shape[1]
    return pl.pallas_call(
        _linear_softmax_kernel,
        grid=(B,),
        in_specs=[
            _act_spec(S, F),
            _full_spec(F, N), _full_spec(1, N),
        ],
        out_specs=pl.BlockSpec((1, S, N), lambda b: (b, 0, 0)),
        out_shape=jax.ShapeDtypeStruct((B, S, N), jnp.float32),
        compiler_params=_PARALLEL_1D,
    )(x, w, b)


# ----------------------------------------------------------------------------
# Model composition
# ----------------------------------------------------------------------------

def get_position_encoding(seq_len, num_features):
    # TODO(synk): standard sinusoidal PE assumed; swap in the reference formula if it differs.
    pos = np.arange(seq_len, dtype=np.float32)[:, None]
    i = np.arange(num_features, dtype=np.float32)[None, :]
    angle = pos / np.power(10000.0, (2.0 * np.floor(i / 2.0)) / num_features)
    pe = np.where(np.mod(np.arange(num_features), 2) == 0,
                  np.sin(angle), np.cos(angle))
    return jnp.asarray(pe, dtype=jnp.float32)  # (S, F)


def decoder_forward(target, encoded, params, num_heads):
    B, S, F = target.shape
    pe = get_position_encoding(S, F)
    x = (target.astype(jnp.float32) + pe[None, :, :]).astype(jnp.bfloat16)
    enc = None if encoded is None else encoded.astype(jnp.bfloat16)
    for lp in params["layers"]:
        x = self_attn_block(x, lp, num_heads)
        if enc is not None:
            x = cross_attn_block(x, enc, lp, num_heads)
        x = ffn_block(x, lp)
    return linear_softmax(x, params["lin_w"], params["lin_b"])  # f32 (B, S, F)


# ----------------------------------------------------------------------------
# Deterministic parameter init (weights/biases bf16, LN params f32)
# ----------------------------------------------------------------------------

def _w(key, shape):
    return (jax.random.normal(key, shape, jnp.float32) * 0.02).astype(jnp.bfloat16)


def init_params(key, num_layers, F, dim_ff):
    layers = []
    for _ in range(num_layers):
        key, k_qkv, k_os, k_qc, k_kvc, k_oc, k_f1, k_f2 = jax.random.split(key, 8)
        layers.append({
            # self-attention: fused QKV weight (F, 3F)
            "wqkv": _w(k_qkv, (F, 3 * F)), "bqkv": jnp.zeros((1, 3 * F), jnp.bfloat16),
            "wo_s": _w(k_os, (F, F)), "bo_s": jnp.zeros((1, F), jnp.bfloat16),
            # cross-attention: Q weight + fused KV weight (F, 2F)
            "wq_c": _w(k_qc, (F, F)), "bq_c": jnp.zeros((1, F), jnp.bfloat16),
            "wkv_c": _w(k_kvc, (F, 2 * F)), "bkv_c": jnp.zeros((1, 2 * F), jnp.bfloat16),
            "wo_c": _w(k_oc, (F, F)), "bo_c": jnp.zeros((1, F), jnp.bfloat16),
            # layernorms (f32)
            "ln1_g": jnp.ones((1, F), jnp.float32), "ln1_b": jnp.zeros((1, F), jnp.float32),
            "ln2_g": jnp.ones((1, F), jnp.float32), "ln2_b": jnp.zeros((1, F), jnp.float32),
            "ln3_g": jnp.ones((1, F), jnp.float32), "ln3_b": jnp.zeros((1, F), jnp.float32),
            # feed-forward
            "ff_w1": _w(k_f1, (F, dim_ff)), "ff_b1": jnp.zeros((1, dim_ff), jnp.bfloat16),
            "ff_w2": _w(k_f2, (dim_ff, F)), "ff_b2": jnp.zeros((1, F), jnp.bfloat16),
        })
    key, k_lin = jax.random.split(key)
    return {
        "layers": layers,
        "lin_w": _w(k_lin, (F, F)),
        "lin_b": jnp.zeros((1, F), jnp.bfloat16),
    }


# ----------------------------------------------------------------------------
# Main
# ----------------------------------------------------------------------------

if __name__ == "__main__":
    # Small but TPU-aligned shapes: F is lane-dense (128), head_dim = 32, S = 8.
    num_layers, num_features, num_heads, dim_ff = 2, 128, 4, 256
    batch, seq = 2, 8

    key = jax.random.PRNGKey(0)
    k_t, k_e, k_p = jax.random.split(key, 3)
    target = jax.random.normal(k_t, (batch, seq, num_features), jnp.float32)
    encoded = jax.random.normal(k_e, (batch, seq, num_features), jnp.float32)
    params = init_params(k_p, num_layers, num_features, dim_ff)

    fwd = jax.jit(functools.partial(decoder_forward, num_heads=num_heads))
    out = fwd(target, encoded, params)
    out = jax.block_until_ready(out)

    assert out.shape == (batch, seq, num_features)
    assert out.dtype == jnp.float32
    # softmax rows sum to 1 (final softmax computed exactly in f32)
    assert bool(jnp.allclose(jnp.sum(out, axis=-1), 1.0, atol=1e-4))
    print("KERNEL_OK")
</pallas_src>

<mosaic_0001>
module attributes {stable_mosaic.version = 11 : i64} {
  func.func @_self_attn_block_kernel(%arg0: i32, %arg1: memref<1x8x128xbf16, #tpu.memory_space<vmem>>, %arg2: memref<128x384xbf16, #tpu.memory_space<vmem>>, %arg3: memref<1x384xbf16, #tpu.memory_space<vmem>>, %arg4: memref<128x128xbf16, #tpu.memory_space<vmem>>, %arg5: memref<1x128xbf16, #tpu.memory_space<vmem>>, %arg6: memref<1x128xf32, #tpu.memory_space<vmem>>, %arg7: memref<1x128xf32, #tpu.memory_space<vmem>>, %arg8: memref<1x8x128xbf16, #tpu.memory_space<vmem>>) attributes {dimension_semantics = [#tpu.dimension_semantics<parallel>], iteration_bounds = array<i64: 2>, scalar_prefetch = 0 : i64, scratch_operands = 0 : i64, tpu.core_type = #tpu.core_type<tc>, window_params = [{transform_indices = @transform_0, window_bounds = array<i64: 1, 8, 128>}, {pipeline_mode = #tpu.pipeline_mode<synchronous>, transform_indices = @transform_1, window_bounds = array<i64: 128, 384>}, {pipeline_mode = #tpu.pipeline_mode<synchronous>, transform_indices = @transform_2, window_bounds = array<i64: 1, 384>}, {pipeline_mode = #tpu.pipeline_mode<synchronous>, transform_indices = @transform_3, window_bounds = array<i64: 128, 128>}, {pipeline_mode = #tpu.pipeline_mode<synchronous>, transform_indices = @transform_4, window_bounds = array<i64: 1, 128>}, {pipeline_mode = #tpu.pipeline_mode<synchronous>, transform_indices = @transform_5, window_bounds = array<i64: 1, 128>}, {pipeline_mode = #tpu.pipeline_mode<synchronous>, transform_indices = @transform_6, window_bounds = array<i64: 1, 128>}, {transform_indices = @transform_7, window_bounds = array<i64: 1, 8, 128>}]} {
    %c0 = arith.constant 0 : index
    %c0_0 = arith.constant 0 : index
    %c0_1 = arith.constant 0 : index
    %0 = vector.load %arg1[%c0, %c0_0, %c0_1] : memref<1x8x128xbf16, #tpu.memory_space<vmem>>, vector<1x8x128xbf16>
    %1 = vector.shape_cast %0 : vector<1x8x128xbf16> to vector<8x128xbf16>
    %c0_2 = arith.constant 0 : index
    %c0_3 = arith.constant 0 : index
    %2 = vector.load %arg2[%c0_2, %c0_3] : memref<128x384xbf16, #tpu.memory_space<vmem>>, vector<128x384xbf16>
    %cst = arith.constant dense<0.000000e+00> : vector<8x384xf32>
    %3 = tpu.matmul %1, %2, %cst {dimension_numbers = #tpu.dot_dimension_numbers<[1], [0], [0], [1], [0, 0, 1, 1], [], []>} : vector<8x128xbf16>, vector<128x384xbf16>, vector<8x384xf32> -> vector<8x384xf32>
    %c0_4 = arith.constant 0 : index
    %c0_5 = arith.constant 0 : index
    %4 = vector.load %arg3[%c0_4, %c0_5] : memref<1x384xbf16, #tpu.memory_space<vmem>>, vector<1x384xbf16>
    %5 = arith.extf %4 : vector<1x384xbf16> to vector<1x384xf32>
    %6 = vector.broadcast %5 : vector<1x384xf32> to vector<8x384xf32>
    %7 = arith.addf %3, %6 : vector<8x384xf32>
    %8 = vector.extract_strided_slice %7 {offsets = [0, 0], sizes = [8, 128], strides = [1, 1]} : vector<8x384xf32> to vector<8x128xf32>
    %9 = vector.extract_strided_slice %7 {offsets = [0, 128], sizes = [8, 128], strides = [1, 1]} : vector<8x384xf32> to vector<8x128xf32>
    %10 = vector.extract_strided_slice %7 {offsets = [0, 256], sizes = [8, 128], strides = [1, 1]} : vector<8x384xf32> to vector<8x128xf32>
    %c0_6 = arith.constant 0 : index
    %c0_7 = arith.constant 0 : index
    %11 = vector.load %arg4[%c0_6, %c0_7] : memref<128x128xbf16, #tpu.memory_space<vmem>>, vector<128x128xbf16>
    %c0_8 = arith.constant 0 : index
    %c0_9 = arith.constant 0 : index
    %12 = vector.load %arg5[%c0_8, %c0_9] : memref<1x128xbf16, #tpu.memory_space<vmem>>, vector<1x128xbf16>
    %c0_10 = arith.constant 0 : index
    %c0_11 = arith.constant 0 : index
    %13 = vector.load %arg6[%c0_10, %c0_11] : memref<1x128xf32, #tpu.memory_space<vmem>>, vector<1x128xf32>
    %c0_12 = arith.constant 0 : index
    %c0_13 = arith.constant 0 : index
    %14 = vector.load %arg7[%c0_12, %c0_13] : memref<1x128xf32, #tpu.memory_space<vmem>>, vector<1x128xf32>
    %15 = arith.truncf %8 : vector<8x128xf32> to vector<8x128xbf16>
    %16 = arith.truncf %9 : vector<8x128xf32> to vector<8x128xbf16>
    %17 = arith.truncf %10 : vector<8x128xf32> to vector<8x128xbf16>
    %18 = vector.extract_strided_slice %15 {offsets = [0, 0], sizes = [8, 32], strides = [1, 1]} : vector<8x128xbf16> to vector<8x32xbf16>
    %19 = vector.extract_strided_slice %16 {offsets = [0, 0], sizes = [8, 32], strides = [1, 1]} : vector<8x128xbf16> to vector<8x32xbf16>
    %20 = vector.extract_strided_slice %17 {offsets = [0, 0], sizes = [8, 32], strides = [1, 1]} : vector<8x128xbf16> to vector<8x32xbf16>
    %cst_14 = arith.constant dense<0.000000e+00> : vector<8x8xf32>
    %21 = tpu.matmul %18, %19, %cst_14 {dimension_numbers = #tpu.dot_dimension_numbers<[1], [1], [0], [0], [0, 0, 1, 0], [], []>} : vector<8x32xbf16>, vector<8x32xbf16>, vector<8x8xf32> -> vector<8x8xf32>
    %cst_15 = arith.constant 0.176776692 : f32
    %22 = vector.broadcast %cst_15 : f32 to vector<8x8xf32>
    %23 = arith.mulf %21, %22 : vector<8x8xf32>
    %24 = tpu.iota {dimensions = array<i32: 0>} : vector<8x8xi32>
    %25 = tpu.iota {dimensions = array<i32: 1>} : vector<8x8xi32>
    %26 = arith.cmpi sle, %25, %24 : vector<8x8xi32>
    %cst_16 = arith.constant -1.000000e+30 : f32
    %27 = vector.broadcast %cst_16 : f32 to vector<8x8xf32>
    %28 = arith.select %26, %23, %27 : vector<8x8xi1>, vector<8x8xf32>
    %cst_17 = arith.constant dense<0xFF800000> : vector<8xf32>
    %29 = vector.multi_reduction <maximumf>, %28, %cst_17 [1] : vector<8x8xf32> to vector<8xf32>
    %30 = vector.shape_cast %29 : vector<8xf32> to vector<8x1xf32>
    %31 = vector.broadcast %30 : vector<8x1xf32> to vector<8x8xf32>
    %32 = arith.subf %28, %31 : vector<8x8xf32>
    %33 = math.exp %32 : vector<8x8xf32>
    %cst_18 = arith.constant dense<0.000000e+00> : vector<8xf32>
    %34 = vector.multi_reduction <add>, %33, %cst_18 [1] : vector<8x8xf32> to vector<8xf32>
    %35 = vector.shape_cast %34 : vector<8xf32> to vector<8x1xf32>
    %36 = tpu.reciprocal %35 {approx = true} : vector<8x1xf32> -> vector<8x1xf32>
    %37 = vector.broadcast %36 : vector<8x1xf32> to vector<8x8xf32>
    %38 = arith.mulf %33, %37 : vector<8x8xf32>
    %39 = arith.truncf %38 : vector<8x8xf32> to vector<8x8xbf16>
    %cst_19 = arith.constant dense<0.000000e+00> : vector<8x32xf32>
    %40 = tpu.matmul %39, %20, %cst_19 {dimension_numbers = #tpu.dot_dimension_numbers<[1], [0], [0], [1], [0, 0, 1, 1], [], []>} : vector<8x8xbf16>, vector<8x32xbf16>, vector<8x32xf32> -> vector<8x32xf32>
    %41 = vector.extract_strided_slice %15 {offsets = [0, 32], sizes = [8, 32], strides = [1, 1]} : vector<8x128xbf16> to vector<8x32xbf16>
    %42 = vector.extract_strided_slice %16 {offsets = [0, 32], sizes = [8, 32], strides = [1, 1]} : vector<8x128xbf16> to vector<8x32xbf16>
    %43 = vector.extract_strided_slice %17 {offsets = [0, 32], sizes = [8, 32], strides = [1, 1]} : vector<8x128xbf16> to vector<8x32xbf16>
    %cst_20 = arith.constant dense<0.000000e+00> : vector<8x8xf32>
    %44 = tpu.matmul %41, %42, %cst_20 {dimension_numbers = #tpu.dot_dimension_numbers<[1], [1], [0], [0], [0, 0, 1, 0], [], []>} : vector<8x32xbf16>, vector<8x32xbf16>, vector<8x8xf32> -> vector<8x8xf32>
    %cst_21 = arith.constant 0.176776692 : f32
    %45 = vector.broadcast %cst_21 : f32 to vector<8x8xf32>
    %46 = arith.mulf %44, %45 : vector<8x8xf32>
    %47 = tpu.iota {dimensions = array<i32: 0>} : vector<8x8xi32>
    %48 = tpu.iota {dimensions = array<i32: 1>} : vector<8x8xi32>
    %49 = arith.cmpi sle, %48, %47 : vector<8x8xi32>
    %cst_22 = arith.constant -1.000000e+30 : f32
    %50 = vector.broadcast %cst_22 : f32 to vector<8x8xf32>
    %51 = arith.select %49, %46, %50 : vector<8x8xi1>, vector<8x8xf32>
    %cst_23 = arith.constant dense<0xFF800000> : vector<8xf32>
    %52 = vector.multi_reduction <maximumf>, %51, %cst_23 [1] : vector<8x8xf32> to vector<8xf32>
    %53 = vector.shape_cast %52 : vector<8xf32> to vector<8x1xf32>
    %54 = vector.broadcast %53 : vector<8x1xf32> to vector<8x8xf32>
    %55 = arith.subf %51, %54 : vector<8x8xf32>
    %56 = math.exp %55 : vector<8x8xf32>
    %cst_24 = arith.constant dense<0.000000e+00> : vector<8xf32>
    %57 = vector.multi_reduction <add>, %56, %cst_24 [1] : vector<8x8xf32> to vector<8xf32>
    %58 = vector.shape_cast %57 : vector<8xf32> to vector<8x1xf32>
    %59 = tpu.reciprocal %58 {approx = true} : vector<8x1xf32> -> vector<8x1xf32>
    %60 = vector.broadcast %59 : vector<8x1xf32> to vector<8x8xf32>
    %61 = arith.mulf %56, %60 : vector<8x8xf32>
    %62 = arith.truncf %61 : vector<8x8xf32> to vector<8x8xbf16>
    %cst_25 = arith.constant dense<0.000000e+00> : vector<8x32xf32>
    %63 = tpu.matmul %62, %43, %cst_25 {dimension_numbers = #tpu.dot_dimension_numbers<[1], [0], [0], [1], [0, 0, 1, 1], [], []>} : vector<8x8xbf16>, vector<8x32xbf16>, vector<8x32xf32> -> vector<8x32xf32>
    %64 = vector.extract_strided_slice %15 {offsets = [0, 64], sizes = [8, 32], strides = [1, 1]} : vector<8x128xbf16> to vector<8x32xbf16>
    %65 = vector.extract_strided_slice %16 {offsets = [0, 64], sizes = [8, 32], strides = [1, 1]} : vector<8x128xbf16> to vector<8x32xbf16>
    %66 = vector.extract_strided_slice %17 {offsets = [0, 64], sizes = [8, 32], strides = [1, 1]} : vector<8x128xbf16> to vector<8x32xbf16>
    %cst_26 = arith.constant dense<0.000000e+00> : vector<8x8xf32>
    %67 = tpu.matmul %64, %65, %cst_26 {dimension_numbers = #tpu.dot_dimension_numbers<[1], [1], [0], [0], [0, 0, 1, 0], [], []>} : vector<8x32xbf16>, vector<8x32xbf16>, vector<8x8xf32> -> vector<8x8xf32>
    %cst_27 = arith.constant 0.176776692 : f32
    %68 = vector.broadcast %cst_27 : f32 to vector<8x8xf32>
    %69 = arith.mulf %67, %68 : vector<8x8xf32>
    %70 = tpu.iota {dimensions = array<i32: 0>} : vector<8x8xi32>
    %71 = tpu.iota {dimensions = array<i32: 1>} : vector<8x8xi32>
    %72 = arith.cmpi sle, %71, %70 : vector<8x8xi32>
    %cst_28 = arith.constant -1.000000e+30 : f32
    %73 = vector.broadcast %cst_28 : f32 to vector<8x8xf32>
    %74 = arith.select %72, %69, %73 : vector<8x8xi1>, vector<8x8xf32>
    %cst_29 = arith.constant dense<0xFF800000> : vector<8xf32>
    %75 = vector.multi_reduction <maximumf>, %74, %cst_29 [1] : vector<8x8xf32> to vector<8xf32>
    %76 = vector.shape_cast %75 : vector<8xf32> to vector<8x1xf32>
    %77 = vector.broadcast %76 : vector<8x1xf32> to vector<8x8xf32>
    %78 = arith.subf %74, %77 : vector<8x8xf32>
    %79 = math.exp %78 : vector<8x8xf32>
    %cst_30 = arith.constant dense<0.000000e+00> : vector<8xf32>
    %80 = vector.multi_reduction <add>, %79, %cst_30 [1] : vector<8x8xf32> to vector<8xf32>
    %81 = vector.shape_cast %80 : vector<8xf32> to vector<8x1xf32>
    %82 = tpu.reciprocal %81 {approx = true} : vector<8x1xf32> -> vector<8x1xf32>
    %83 = vector.broadcast %82 : vector<8x1xf32> to vector<8x8xf32>
    %84 = arith.mulf %79, %83 : vector<8x8xf32>
    %85 = arith.truncf %84 : vector<8x8xf32> to vector<8x8xbf16>
    %cst_31 = arith.constant dense<0.000000e+00> : vector<8x32xf32>
    %86 = tpu.matmul %85, %66, %cst_31 {dimension_numbers = #tpu.dot_dimension_numbers<[1], [0], [0], [1], [0, 0, 1, 1], [], []>} : vector<8x8xbf16>, vector<8x32xbf16>, vector<8x32xf32> -> vector<8x32xf32>
    %87 = vector.extract_strided_slice %15 {offsets = [0, 96], sizes = [8, 32], strides = [1, 1]} : vector<8x128xbf16> to vector<8x32xbf16>
    %88 = vector.extract_strided_slice %16 {offsets = [0, 96], sizes = [8, 32], strides = [1, 1]} : vector<8x128xbf16> to vector<8x32xbf16>
    %89 = vector.extract_strided_slice %17 {offsets = [0, 96], sizes = [8, 32], strides = [1, 1]} : vector<8x128xbf16> to vector<8x32xbf16>
    %cst_32 = arith.constant dense<0.000000e+00> : vector<8x8xf32>
    %90 = tpu.matmul %87, %88, %cst_32 {dimension_numbers = #tpu.dot_dimension_numbers<[1], [1], [0], [0], [0, 0, 1, 0], [], []>} : vector<8x32xbf16>, vector<8x32xbf16>, vector<8x8xf32> -> vector<8x8xf32>
    %cst_33 = arith.constant 0.176776692 : f32
    %91 = vector.broadcast %cst_33 : f32 to vector<8x8xf32>
    %92 = arith.mulf %90, %91 : vector<8x8xf32>
    %93 = tpu.iota {dimensions = array<i32: 0>} : vector<8x8xi32>
    %94 = tpu.iota {dimensions = array<i32: 1>} : vector<8x8xi32>
    %95 = arith.cmpi sle, %94, %93 : vector<8x8xi32>
    %cst_34 = arith.constant -1.000000e+30 : f32
    %96 = vector.broadcast %cst_34 : f32 to vector<8x8xf32>
    %97 = arith.select %95, %92, %96 : vector<8x8xi1>, vector<8x8xf32>
    %cst_35 = arith.constant dense<0xFF800000> : vector<8xf32>
    %98 = vector.multi_reduction <maximumf>, %97, %cst_35 [1] : vector<8x8xf32> to vector<8xf32>
    %99 = vector.shape_cast %98 : vector<8xf32> to vector<8x1xf32>
    %100 = vector.broadcast %99 : vector<8x1xf32> to vector<8x8xf32>
    %101 = arith.subf %97, %100 : vector<8x8xf32>
    %102 = math.exp %101 : vector<8x8xf32>
    %cst_36 = arith.constant dense<0.000000e+00> : vector<8xf32>
    %103 = vector.multi_reduction <add>, %102, %cst_36 [1] : vector<8x8xf32> to vector<8xf32>
    %104 = vector.shape_cast %103 : vector<8xf32> to vector<8x1xf32>
    %105 = tpu.reciprocal %104 {approx = true} : vector<8x1xf32> -> vector<8x1xf32>
    %106 = vector.broadcast %105 : vector<8x1xf32> to vector<8x8xf32>
    %107 = arith.mulf %102, %106 : vector<8x8xf32>
    %108 = arith.truncf %107 : vector<8x8xf32> to vector<8x8xbf16>
    %cst_37 = arith.constant dense<0.000000e+00> : vector<8x32xf32>
    %109 = tpu.matmul %108, %89, %cst_37 {dimension_numbers = #tpu.dot_dimension_numbers<[1], [0], [0], [1], [0, 0, 1, 1], [], []>} : vector<8x8xbf16>, vector<8x32xbf16>, vector<8x32xf32> -> vector<8x32xf32>
    %110 = tpu.concatenate %40, %63, %86, %109 in 1 : vector<8x32xf32>, vector<8x32xf32>, vector<8x32xf32>, vector<8x32xf32> -> vector<8x128xf32>
    %111 = arith.truncf %110 : vector<8x128xf32> to vector<8x128xbf16>
    %cst_38 = arith.constant dense<0.000000e+00> : vector<8x128xf32>
    %112 = tpu.matmul %111, %11, %cst_38 {dimension_numbers = #tpu.dot_dimension_numbers<[1], [0], [0], [1], [0, 0, 1, 1], [], []>} : vector<8x128xbf16>, vector<128x128xbf16>, vector<8x128xf32> -> vector<8x128xf32>
    %113 = arith.extf %12 : vector<1x128xbf16> to vector<1x128xf32>
    %114 = vector.broadcast %113 : vector<1x128xf32> to vector<8x128xf32>
    %115 = arith.addf %112, %114 : vector<8x128xf32>
    %116 = arith.extf %1 : vector<8x128xbf16> to vector<8x128xf32>
    %117 = arith.addf %116, %115 : vector<8x128xf32>
    %cst_39 = arith.constant dense<0.000000e+00> : vector<8xf32>
    %118 = vector.multi_reduction <add>, %117, %cst_39 [1] : vector<8x128xf32> to vector<8xf32>
    %119 = vector.shape_cast %118 : vector<8xf32> to vector<8x1xf32>
    %cst_40 = arith.constant 1.280000e+02 : f32
    %120 = vector.broadcast %cst_40 : f32 to vector<8x1xf32>
    %121 = arith.divf %119, %120 : vector<8x1xf32>
    %122 = vector.broadcast %121 : vector<8x1xf32> to vector<8x128xf32>
    %123 = arith.subf %117, %122 : vector<8x128xf32>
    %124 = arith.mulf %123, %123 : vector<8x128xf32>
    %cst_41 = arith.constant dense<0.000000e+00> : vector<8xf32>
    %125 = vector.multi_reduction <add>, %124, %cst_41 [1] : vector<8x128xf32> to vector<8xf32>
    %126 = vector.shape_cast %125 : vector<8xf32> to vector<8x1xf32>
    %cst_42 = arith.constant 1.280000e+02 : f32
    %127 = vector.broadcast %cst_42 : f32 to vector<8x1xf32>
    %128 = arith.divf %126, %127 : vector<8x1xf32>
    %129 = vector.broadcast %121 : vector<8x1xf32> to vector<8x128xf32>
    %130 = arith.subf %117, %129 : vector<8x128xf32>
    %cst_43 = arith.constant 9.99999974E-6 : f32
    %131 = vector.broadcast %cst_43 : f32 to vector<8x1xf32>
    %132 = arith.addf %128, %131 : vector<8x1xf32>
    %133 = math.rsqrt %132 : vector<8x1xf32>
    %134 = vector.broadcast %133 : vector<8x1xf32> to vector<8x128xf32>
    %135 = arith.mulf %130, %134 : vector<8x128xf32>
    %136 = vector.broadcast %13 : vector<1x128xf32> to vector<8x128xf32>
    %137 = arith.mulf %135, %136 : vector<8x128xf32>
    %138 = vector.broadcast %14 : vector<1x128xf32> to vector<8x128xf32>
    %139 = arith.addf %137, %138 : vector<8x128xf32>
    %140 = arith.truncf %139 : vector<8x128xf32> to vector<8x128xbf16>
    %c0_44 = arith.constant 0 : index
    %c0_45 = arith.constant 0 : index
    %c0_46 = arith.constant 0 : index
    %141 = vector.load %arg8[%c0_44, %c0_45, %c0_46] : memref<1x8x128xbf16, #tpu.memory_space<vmem>>, vector<1x8x128xbf16>
    %142 = vector.shape_cast %141 : vector<1x8x128xbf16> to vector<8x128xbf16>
    %143 = vector.shape_cast %140 : vector<8x128xbf16> to vector<1x8x128xbf16>
    tpu.vector_store %arg8[%c0_44, %c0_45, %c0_46], %143 {strides = array<i32>} : memref<1x8x128xbf16, #tpu.memory_space<vmem>>, vector<1x8x128xbf16>,
    return
  }
  func.func @transform_0(%arg0: i32) -> (i32, i32, i32) {
    %c0_i32 = arith.constant 0 : i32
    %c0_i32_0 = arith.constant 0 : i32
    %c0_i32_1 = arith.constant 0 : i32
    return %arg0, %c0_i32, %c0_i32_0 : i32, i32, i32
  }
  func.func @transform_1(%arg0: i32) -> (i32, i32) {
    %c0_i32 = arith.constant 0 : i32
    %c0_i32_0 = arith.constant 0 : i32
    %c0_i32_1 = arith.constant 0 : i32
    return %c0_i32, %c0_i32_0 : i32, i32
  }
  func.func @transform_2(%arg0: i32) -> (i32, i32) {
    %c0_i32 = arith.constant 0 : i32
    %c0_i32_0 = arith.constant 0 : i32
    %c0_i32_1 = arith.constant 0 : i32
    return %c0_i32, %c0_i32_0 : i32, i32
  }
  func.func @transform_3(%arg0: i32) -> (i32, i32) {
    %c0_i32 = arith.constant 0 : i32
    %c0_i32_0 = arith.constant 0 : i32
    %c0_i32_1 = arith.constant 0 : i32
    return %c0_i32, %c0_i32_0 : i32, i32
  }
  func.func @transform_4(%arg0: i32) -> (i32, i32) {
    %c0_i32 = arith.constant 0 : i32
    %c0_i32_0 = arith.constant 0 : i32
    %c0_i32_1 = arith.constant 0 : i32
    return %c0_i32, %c0_i32_0 : i32, i32
  }
  func.func @transform_5(%arg0: i32) -> (i32, i32) {
    %c0_i32 = arith.constant 0 : i32
    %c0_i32_0 = arith.constant 0 : i32
    %c0_i32_1 = arith.constant 0 : i32
    return %c0_i32, %c0_i32_0 : i32, i32
  }
  func.func @transform_6(%arg0: i32) -> (i32, i32) {
    %c0_i32 = arith.constant 0 : i32
    %c0_i32_0 = arith.constant 0 : i32
    %c0_i32_1 = arith.constant 0 : i32
    return %c0_i32, %c0_i32_0 : i32, i32
  }
  func.func @transform_7(%arg0: i32) -> (i32, i32, i32) {
    %c0_i32 = arith.constant 0 : i32
    %c0_i32_0 = arith.constant 0 : i32
    %c0_i32_1 = arith.constant 0 : i32
    return %arg0, %c0_i32, %c0_i32_0 : i32, i32, i32
  }
}

module attributes {stable_mosaic.version = 11 : i64} {
  func.func @_cross_attn_block_kernel(%arg0: i32, %arg1: memref<1x8x128xbf16, #tpu.memory_space<vmem>>, %arg2: memref<1x8x128xbf16, #tpu.memory_space<vmem>>, %arg3: memref<128x128xbf16, #tpu.memory_space<vmem>>, %arg4: memref<1x128xbf16, #tpu.memory_space<vmem>>, %arg5: memref<128x256xbf16, #tpu.memory_space<vmem>>, %arg6: memref<1x256xbf16, #tpu.memory_space<vmem>>, %arg7: memref<128x128xbf16, #tpu.memory_space<vmem>>, %arg8: memref<1x128xbf16, #tpu.memory_space<vmem>>, %arg9: memref<1x128xf32, #tpu.memory_space<vmem>>, %arg10: memref<1x128xf32, #tpu.memory_space<vmem>>, %arg11: memref<1x8x128xbf16, #tpu.memory_space<vmem>>) attributes {dimension_semantics = [#tpu.dimension_semantics<parallel>], iteration_bounds = array<i64: 2>, scalar_prefetch = 0 : i64, scratch_operands = 0 : i64, tpu.core_type = #tpu.core_type<tc>, window_params = [{transform_indices = @transform_0, window_bounds = array<i64: 1, 8, 128>}, {transform_indices = @transform_1, window_bounds = array<i64: 1, 8, 128>}, {pipeline_mode = #tpu.pipeline_mode<synchronous>, transform_indices = @transform_2, window_bounds = array<i64: 128, 128>}, {pipeline_mode = #tpu.pipeline_mode<synchronous>, transform_indices = @transform_3, window_bounds = array<i64: 1, 128>}, {pipeline_mode = #tpu.pipeline_mode<synchronous>, transform_indices = @transform_4, window_bounds = array<i64: 128, 256>}, {pipeline_mode = #tpu.pipeline_mode<synchronous>, transform_indices = @transform_5, window_bounds = array<i64: 1, 256>}, {pipeline_mode = #tpu.pipeline_mode<synchronous>, transform_indices = @transform_6, window_bounds = array<i64: 128, 128>}, {pipeline_mode = #tpu.pipeline_mode<synchronous>, transform_indices = @transform_7, window_bounds = array<i64: 1, 128>}, {pipeline_mode = #tpu.pipeline_mode<synchronous>, transform_indices = @transform_8, window_bounds = array<i64: 1, 128>}, {pipeline_mode = #tpu.pipeline_mode<synchronous>, transform_indices = @transform_9, window_bounds = array<i64: 1, 128>}, {transform_indices = @transform_10, window_bounds = array<i64: 1, 8, 128>}]} {
    %c0 = arith.constant 0 : index
    %c0_0 = arith.constant 0 : index
    %c0_1 = arith.constant 0 : index
    %0 = vector.load %arg1[%c0, %c0_0, %c0_1] : memref<1x8x128xbf16, #tpu.memory_space<vmem>>, vector<1x8x128xbf16>
    %1 = vector.shape_cast %0 : vector<1x8x128xbf16> to vector<8x128xbf16>
    %c0_2 = arith.constant 0 : index
    %c0_3 = arith.constant 0 : index
    %c0_4 = arith.constant 0 : index
    %2 = vector.load %arg2[%c0_2, %c0_3, %c0_4] : memref<1x8x128xbf16, #tpu.memory_space<vmem>>, vector<1x8x128xbf16>
    %3 = vector.shape_cast %2 : vector<1x8x128xbf16> to vector<8x128xbf16>
    %c0_5 = arith.constant 0 : index
    %c0_6 = arith.constant 0 : index
    %4 = vector.load %arg3[%c0_5, %c0_6] : memref<128x128xbf16, #tpu.memory_space<vmem>>, vector<128x128xbf16>
    %cst = arith.constant dense<0.000000e+00> : vector<8x128xf32>
    %5 = tpu.matmul %1, %4, %cst {dimension_numbers = #tpu.dot_dimension_numbers<[1], [0], [0], [1], [0, 0, 1, 1], [], []>} : vector<8x128xbf16>, vector<128x128xbf16>, vector<8x128xf32> -> vector<8x128xf32>
    %c0_7 = arith.constant 0 : index
    %c0_8 = arith.constant 0 : index
    %6 = vector.load %arg4[%c0_7, %c0_8] : memref<1x128xbf16, #tpu.memory_space<vmem>>, vector<1x128xbf16>
    %7 = arith.extf %6 : vector<1x128xbf16> to vector<1x128xf32>
    %8 = vector.broadcast %7 : vector<1x128xf32> to vector<8x128xf32>
    %9 = arith.addf %5, %8 : vector<8x128xf32>
    %c0_9 = arith.constant 0 : index
    %c0_10 = arith.constant 0 : index
    %10 = vector.load %arg5[%c0_9, %c0_10] : memref<128x256xbf16, #tpu.memory_space<vmem>>, vector<128x256xbf16>
    %cst_11 = arith.constant dense<0.000000e+00> : vector<8x256xf32>
    %11 = tpu.matmul %3, %10, %cst_11 {dimension_numbers = #tpu.dot_dimension_numbers<[1], [0], [0], [1], [0, 0, 1, 1], [], []>} : vector<8x128xbf16>, vector<128x256xbf16>, vector<8x256xf32> -> vector<8x256xf32>
    %c0_12 = arith.constant 0 : index
    %c0_13 = arith.constant 0 : index
    %12 = vector.load %arg6[%c0_12, %c0_13] : memref<1x256xbf16, #tpu.memory_space<vmem>>, vector<1x256xbf16>
    %13 = arith.extf %12 : vector<1x256xbf16> to vector<1x256xf32>
    %14 = vector.broadcast %13 : vector<1x256xf32> to vector<8x256xf32>
    %15 = arith.addf %11, %14 : vector<8x256xf32>
    %16 = vector.extract_strided_slice %15 {offsets = [0, 0], sizes = [8, 128], strides = [1, 1]} : vector<8x256xf32> to vector<8x128xf32>
    %17 = vector.extract_strided_slice %15 {offsets = [0, 128], sizes = [8, 128], strides = [1, 1]} : vector<8x256xf32> to vector<8x128xf32>
    %c0_14 = arith.constant 0 : index
    %c0_15 = arith.constant 0 : index
    %18 = vector.load %arg7[%c0_14, %c0_15] : memref<128x128xbf16, #tpu.memory_space<vmem>>, vector<128x128xbf16>
    %c0_16 = arith.constant 0 : index
    %c0_17 = arith.constant 0 : index
    %19 = vector.load %arg8[%c0_16, %c0_17] : memref<1x128xbf16, #tpu.memory_space<vmem>>, vector<1x128xbf16>
    %c0_18 = arith.constant 0 : index
    %c0_19 = arith.constant 0 : index
    %20 = vector.load %arg9[%c0_18, %c0_19] : memref<1x128xf32, #tpu.memory_space<vmem>>, vector<1x128xf32>
    %c0_20 = arith.constant 0 : index
    %c0_21 = arith.constant 0 : index
    %21 = vector.load %arg10[%c0_20, %c0_21] : memref<1x128xf32, #tpu.memory_space<vmem>>, vector<1x128xf32>
    %22 = arith.truncf %9 : vector<8x128xf32> to vector<8x128xbf16>
    %23 = arith.truncf %16 : vector<8x128xf32> to vector<8x128xbf16>
    %24 = arith.truncf %17 : vector<8x128xf32> to vector<8x128xbf16>
    %25 = vector.extract_strided_slice %22 {offsets = [0, 0], sizes = [8, 32], strides = [1, 1]} : vector<8x128xbf16> to vector<8x32xbf16>
    %26 = vector.extract_strided_slice %23 {offsets = [0, 0], sizes = [8, 32], strides = [1, 1]} : vector<8x128xbf16> to vector<8x32xbf16>
    %27 = vector.extract_strided_slice %24 {offsets = [0, 0], sizes = [8, 32], strides = [1, 1]} : vector<8x128xbf16> to vector<8x32xbf16>
    %cst_22 = arith.constant dense<0.000000e+00> : vector<8x8xf32>
    %28 = tpu.matmul %25, %26, %cst_22 {dimension_numbers = #tpu.dot_dimension_numbers<[1], [1], [0], [0], [0, 0, 1, 0], [], []>} : vector<8x32xbf16>, vector<8x32xbf16>, vector<8x8xf32> -> vector<8x8xf32>
    %cst_23 = arith.constant 0.176776692 : f32
    %29 = vector.broadcast %cst_23 : f32 to vector<8x8xf32>
    %30 = arith.mulf %28, %29 : vector<8x8xf32>
    %cst_24 = arith.constant dense<0xFF800000> : vector<8xf32>
    %31 = vector.multi_reduction <maximumf>, %30, %cst_24 [1] : vector<8x8xf32> to vector<8xf32>
    %32 = vector.shape_cast %31 : vector<8xf32> to vector<8x1xf32>
    %33 = vector.broadcast %32 : vector<8x1xf32> to vector<8x8xf32>
    %34 = arith.subf %30, %33 : vector<8x8xf32>
    %35 = math.exp %34 : vector<8x8xf32>
    %cst_25 = arith.constant dense<0.000000e+00> : vector<8xf32>
    %36 = vector.multi_reduction <add>, %35, %cst_25 [1] : vector<8x8xf32> to vector<8xf32>
    %37 = vector.shape_cast %36 : vector<8xf32> to vector<8x1xf32>
    %38 = tpu.reciprocal %37 {approx = true} : vector<8x1xf32> -> vector<8x1xf32>
    %39 = vector.broadcast %38 : vector<8x1xf32> to vector<8x8xf32>
    %40 = arith.mulf %35, %39 : vector<8x8xf32>
    %41 = arith.truncf %40 : vector<8x8xf32> to vector<8x8xbf16>
    %cst_26 = arith.constant dense<0.000000e+00> : vector<8x32xf32>
    %42 = tpu.matmul %41, %27, %cst_26 {dimension_numbers = #tpu.dot_dimension_numbers<[1], [0], [0], [1], [0, 0, 1, 1], [], []>} : vector<8x8xbf16>, vector<8x32xbf16>, vector<8x32xf32> -> vector<8x32xf32>
    %43 = vector.extract_strided_slice %22 {offsets = [0, 32], sizes = [8, 32], strides = [1, 1]} : vector<8x128xbf16> to vector<8x32xbf16>
    %44 = vector.extract_strided_slice %23 {offsets = [0, 32], sizes = [8, 32], strides = [1, 1]} : vector<8x128xbf16> to vector<8x32xbf16>
    %45 = vector.extract_strided_slice %24 {offsets = [0, 32], sizes = [8, 32], strides = [1, 1]} : vector<8x128xbf16> to vector<8x32xbf16>
    %cst_27 = arith.constant dense<0.000000e+00> : vector<8x8xf32>
    %46 = tpu.matmul %43, %44, %cst_27 {dimension_numbers = #tpu.dot_dimension_numbers<[1], [1], [0], [0], [0, 0, 1, 0], [], []>} : vector<8x32xbf16>, vector<8x32xbf16>, vector<8x8xf32> -> vector<8x8xf32>
    %cst_28 = arith.constant 0.176776692 : f32
    %47 = vector.broadcast %cst_28 : f32 to vector<8x8xf32>
    %48 = arith.mulf %46, %47 : vector<8x8xf32>
    %cst_29 = arith.constant dense<0xFF800000> : vector<8xf32>
    %49 = vector.multi_reduction <maximumf>, %48, %cst_29 [1] : vector<8x8xf32> to vector<8xf32>
    %50 = vector.shape_cast %49 : vector<8xf32> to vector<8x1xf32>
    %51 = vector.broadcast %50 : vector<8x1xf32> to vector<8x8xf32>
    %52 = arith.subf %48, %51 : vector<8x8xf32>
    %53 = math.exp %52 : vector<8x8xf32>
    %cst_30 = arith.constant dense<0.000000e+00> : vector<8xf32>
    %54 = vector.multi_reduction <add>, %53, %cst_30 [1] : vector<8x8xf32> to vector<8xf32>
    %55 = vector.shape_cast %54 : vector<8xf32> to vector<8x1xf32>
    %56 = tpu.reciprocal %55 {approx = true} : vector<8x1xf32> -> vector<8x1xf32>
    %57 = vector.broadcast %56 : vector<8x1xf32> to vector<8x8xf32>
    %58 = arith.mulf %53, %57 : vector<8x8xf32>
    %59 = arith.truncf %58 : vector<8x8xf32> to vector<8x8xbf16>
    %cst_31 = arith.constant dense<0.000000e+00> : vector<8x32xf32>
    %60 = tpu.matmul %59, %45, %cst_31 {dimension_numbers = #tpu.dot_dimension_numbers<[1], [0], [0], [1], [0, 0, 1, 1], [], []>} : vector<8x8xbf16>, vector<8x32xbf16>, vector<8x32xf32> -> vector<8x32xf32>
    %61 = vector.extract_strided_slice %22 {offsets = [0, 64], sizes = [8, 32], strides = [1, 1]} : vector<8x128xbf16> to vector<8x32xbf16>
    %62 = vector.extract_strided_slice %23 {offsets = [0, 64], sizes = [8, 32], strides = [1, 1]} : vector<8x128xbf16> to vector<8x32xbf16>
    %63 = vector.extract_strided_slice %24 {offsets = [0, 64], sizes = [8, 32], strides = [1, 1]} : vector<8x128xbf16> to vector<8x32xbf16>
    %cst_32 = arith.constant dense<0.000000e+00> : vector<8x8xf32>
    %64 = tpu.matmul %61, %62, %cst_32 {dimension_numbers = #tpu.dot_dimension_numbers<[1], [1], [0], [0], [0, 0, 1, 0], [], []>} : vector<8x32xbf16>, vector<8x32xbf16>, vector<8x8xf32> -> vector<8x8xf32>
    %cst_33 = arith.constant 0.176776692 : f32
    %65 = vector.broadcast %cst_33 : f32 to vector<8x8xf32>
    %66 = arith.mulf %64, %65 : vector<8x8xf32>
    %cst_34 = arith.constant dense<0xFF800000> : vector<8xf32>
    %67 = vector.multi_reduction <maximumf>, %66, %cst_34 [1] : vector<8x8xf32> to vector<8xf32>
    %68 = vector.shape_cast %67 : vector<8xf32> to vector<8x1xf32>
    %69 = vector.broadcast %68 : vector<8x1xf32> to vector<8x8xf32>
    %70 = arith.subf %66, %69 : vector<8x8xf32>
    %71 = math.exp %70 : vector<8x8xf32>
    %cst_35 = arith.constant dense<0.000000e+00> : vector<8xf32>
    %72 = vector.multi_reduction <add>, %71, %cst_35 [1] : vector<8x8xf32> to vector<8xf32>
    %73 = vector.shape_cast %72 : vector<8xf32> to vector<8x1xf32>
    %74 = tpu.reciprocal %73 {approx = true} : vector<8x1xf32> -> vector<8x1xf32>
    %75 = vector.broadcast %74 : vector<8x1xf32> to vector<8x8xf32>
    %76 = arith.mulf %71, %75 : vector<8x8xf32>
    %77 = arith.truncf %76 : vector<8x8xf32> to vector<8x8xbf16>
    %cst_36 = arith.constant dense<0.000000e+00> : vector<8x32xf32>
    %78 = tpu.matmul %77, %63, %cst_36 {dimension_numbers = #tpu.dot_dimension_numbers<[1], [0], [0], [1], [0, 0, 1, 1], [], []>} : vector<8x8xbf16>, vector<8x32xbf16>, vector<8x32xf32> -> vector<8x32xf32>
    %79 = vector.extract_strided_slice %22 {offsets = [0, 96], sizes = [8, 32], strides = [1, 1]} : vector<8x128xbf16> to vector<8x32xbf16>
    %80 = vector.extract_strided_slice %23 {offsets = [0, 96], sizes = [8, 32], strides = [1, 1]} : vector<8x128xbf16> to vector<8x32xbf16>
    %81 = vector.extract_strided_slice %24 {offsets = [0, 96], sizes = [8, 32], strides = [1, 1]} : vector<8x128xbf16> to vector<8x32xbf16>
    %cst_37 = arith.constant dense<0.000000e+00> : vector<8x8xf32>
    %82 = tpu.matmul %79, %80, %cst_37 {dimension_numbers = #tpu.dot_dimension_numbers<[1], [1], [0], [0], [0, 0, 1, 0], [], []>} : vector<8x32xbf16>, vector<8x32xbf16>, vector<8x8xf32> -> vector<8x8xf32>
    %cst_38 = arith.constant 0.176776692 : f32
    %83 = vector.broadcast %cst_38 : f32 to vector<8x8xf32>
    %84 = arith.mulf %82, %83 : vector<8x8xf32>
    %cst_39 = arith.constant dense<0xFF800000> : vector<8xf32>
    %85 = vector.multi_reduction <maximumf>, %84, %cst_39 [1] : vector<8x8xf32> to vector<8xf32>
    %86 = vector.shape_cast %85 : vector<8xf32> to vector<8x1xf32>
    %87 = vector.broadcast %86 : vector<8x1xf32> to vector<8x8xf32>
    %88 = arith.subf %84, %87 : vector<8x8xf32>
    %89 = math.exp %88 : vector<8x8xf32>
    %cst_40 = arith.constant dense<0.000000e+00> : vector<8xf32>
    %90 = vector.multi_reduction <add>, %89, %cst_40 [1] : vector<8x8xf32> to vector<8xf32>
    %91 = vector.shape_cast %90 : vector<8xf32> to vector<8x1xf32>
    %92 = tpu.reciprocal %91 {approx = true} : vector<8x1xf32> -> vector<8x1xf32>
    %93 = vector.broadcast %92 : vector<8x1xf32> to vector<8x8xf32>
    %94 = arith.mulf %89, %93 : vector<8x8xf32>
    %95 = arith.truncf %94 : vector<8x8xf32> to vector<8x8xbf16>
    %cst_41 = arith.constant dense<0.000000e+00> : vector<8x32xf32>
    %96 = tpu.matmul %95, %81, %cst_41 {dimension_numbers = #tpu.dot_dimension_numbers<[1], [0], [0], [1], [0, 0, 1, 1], [], []>} : vector<8x8xbf16>, vector<8x32xbf16>, vector<8x32xf32> -> vector<8x32xf32>
    %97 = tpu.concatenate %42, %60, %78, %96 in 1 : vector<8x32xf32>, vector<8x32xf32>, vector<8x32xf32>, vector<8x32xf32> -> vector<8x128xf32>
    %98 = arith.truncf %97 : vector<8x128xf32> to vector<8x128xbf16>
    %cst_42 = arith.constant dense<0.000000e+00> : vector<8x128xf32>
    %99 = tpu.matmul %98, %18, %cst_42 {dimension_numbers = #tpu.dot_dimension_numbers<[1], [0], [0], [1], [0, 0, 1, 1], [], []>} : vector<8x128xbf16>, vector<128x128xbf16>, vector<8x128xf32> -> vector<8x128xf32>
    %100 = arith.extf %19 : vector<1x128xbf16> to vector<1x128xf32>
    %101 = vector.broadcast %100 : vector<1x128xf32> to vector<8x128xf32>
    %102 = arith.addf %99, %101 : vector<8x128xf32>
    %103 = arith.extf %1 : vector<8x128xbf16> to vector<8x128xf32>
    %104 = arith.addf %103, %102 : vector<8x128xf32>
    %cst_43 = arith.constant dense<0.000000e+00> : vector<8xf32>
    %105 = vector.multi_reduction <add>, %104, %cst_43 [1] : vector<8x128xf32> to vector<8xf32>
    %106 = vector.shape_cast %105 : vector<8xf32> to vector<8x1xf32>
    %cst_44 = arith.constant 1.280000e+02 : f32
    %107 = vector.broadcast %cst_44 : f32 to vector<8x1xf32>
    %108 = arith.divf %106, %107 : vector<8x1xf32>
    %109 = vector.broadcast %108 : vector<8x1xf32> to vector<8x128xf32>
    %110 = arith.subf %104, %109 : vector<8x128xf32>
    %111 = arith.mulf %110, %110 : vector<8x128xf32>
    %cst_45 = arith.constant dense<0.000000e+00> : vector<8xf32>
    %112 = vector.multi_reduction <add>, %111, %cst_45 [1] : vector<8x128xf32> to vector<8xf32>
    %113 = vector.shape_cast %112 : vector<8xf32> to vector<8x1xf32>
    %cst_46 = arith.constant 1.280000e+02 : f32
    %114 = vector.broadcast %cst_46 : f32 to vector<8x1xf32>
    %115 = arith.divf %113, %114 : vector<8x1xf32>
    %116 = vector.broadcast %108 : vector<8x1xf32> to vector<8x128xf32>
    %117 = arith.subf %104, %116 : vector<8x128xf32>
    %cst_47 = arith.constant 9.99999974E-6 : f32
    %118 = vector.broadcast %cst_47 : f32 to vector<8x1xf32>
    %119 = arith.addf %115, %118 : vector<8x1xf32>
    %120 = math.rsqrt %119 : vector<8x1xf32>
    %121 = vector.broadcast %120 : vector<8x1xf32> to vector<8x128xf32>
    %122 = arith.mulf %117, %121 : vector<8x128xf32>
    %123 = vector.broadcast %20 : vector<1x128xf32> to vector<8x128xf32>
    %124 = arith.mulf %122, %123 : vector<8x128xf32>
    %125 = vector.broadcast %21 : vector<1x128xf32> to vector<8x128xf32>
    %126 = arith.addf %124, %125 : vector<8x128xf32>
    %127 = arith.truncf %126 : vector<8x128xf32> to vector<8x128xbf16>
    %c0_48 = arith.constant 0 : index
    %c0_49 = arith.constant 0 : index
    %c0_50 = arith.constant 0 : index
    %128 = vector.load %arg11[%c0_48, %c0_49, %c0_50] : memref<1x8x128xbf16, #tpu.memory_space<vmem>>, vector<1x8x128xbf16>
    %129 = vector.shape_cast %128 : vector<1x8x128xbf16> to vector<8x128xbf16>
    %130 = vector.shape_cast %127 : vector<8x128xbf16> to vector<1x8x128xbf16>
    tpu.vector_store %arg11[%c0_48, %c0_49, %c0_50], %130 {strides = array<i32>} : memref<1x8x128xbf16, #tpu.memory_space<vmem>>, vector<1x8x128xbf16>,
    return
  }
  func.func @transform_0(%arg0: i32) -> (i32, i32, i32) {
    %c0_i32 = arith.constant 0 : i32
    %c0_i32_0 = arith.constant 0 : i32
    %c0_i32_1 = arith.constant 0 : i32
    return %arg0, %c0_i32, %c0_i32_0 : i32, i32, i32
  }
  func.func @transform_1(%arg0: i32) -> (i32, i32, i32) {
    %c0_i32 = arith.constant 0 : i32
    %c0_i32_0 = arith.constant 0 : i32
    %c0_i32_1 = arith.constant 0 : i32
    return %arg0, %c0_i32, %c0_i32_0 : i32, i32, i32
  }
  func.func @transform_2(%arg0: i32) -> (i32, i32) {
    %c0_i32 = arith.constant 0 : i32
    %c0_i32_0 = arith.constant 0 : i32
    %c0_i32_1 = arith.constant 0 : i32
    return %c0_i32, %c0_i32_0 : i32, i32
  }
  func.func @transform_3(%arg0: i32) -> (i32, i32) {
    %c0_i32 = arith.constant 0 : i32
    %c0_i32_0 = arith.constant 0 : i32
    %c0_i32_1 = arith.constant 0 : i32
    return %c0_i32, %c0_i32_0 : i32, i32
  }
  func.func @transform_4(%arg0: i32) -> (i32, i32) {
    %c0_i32 = arith.constant 0 : i32
    %c0_i32_0 = arith.constant 0 : i32
    %c0_i32_1 = arith.constant 0 : i32
    return %c0_i32, %c0_i32_0 : i32, i32
  }
  func.func @transform_5(%arg0: i32) -> (i32, i32) {
    %c0_i32 = arith.constant 0 : i32
    %c0_i32_0 = arith.constant 0 : i32
    %c0_i32_1 = arith.constant 0 : i32
    return %c0_i32, %c0_i32_0 : i32, i32
  }
  func.func @transform_6(%arg0: i32) -> (i32, i32) {
    %c0_i32 = arith.constant 0 : i32
    %c0_i32_0 = arith.constant 0 : i32
    %c0_i32_1 = arith.constant 0 : i32
    return %c0_i32, %c0_i32_0 : i32, i32
  }
  func.func @transform_7(%arg0: i32) -> (i32, i32) {
    %c0_i32 = arith.constant 0 : i32
    %c0_i32_0 = arith.constant 0 : i32
    %c0_i32_1 = arith.constant 0 : i32
    return %c0_i32, %c0_i32_0 : i32, i32
  }
  func.func @transform_8(%arg0: i32) -> (i32, i32) {
    %c0_i32 = arith.constant 0 : i32
    %c0_i32_0 = arith.constant 0 : i32
    %c0_i32_1 = arith.constant 0 : i32
    return %c0_i32, %c0_i32_0 : i32, i32
  }
  func.func @transform_9(%arg0: i32) -> (i32, i32) {
    %c0_i32 = arith.constant 0 : i32
    %c0_i32_0 = arith.constant 0 : i32
    %c0_i32_1 = arith.constant 0 : i32
    return %c0_i32, %c0_i32_0 : i32, i32
  }
  func.func @transform_10(%arg0: i32) -> (i32, i32, i32) {
    %c0_i32 = arith.constant 0 : i32
    %c0_i32_0 = arith.constant 0 : i32
    %c0_i32_1 = arith.constant 0 : i32
    return %arg0, %c0_i32, %c0_i32_0 : i32, i32, i32
  }
}

module attributes {stable_mosaic.version = 11 : i64} {
  func.func @_ffn_block_kernel(%arg0: i32, %arg1: memref<1x8x128xbf16, #tpu.memory_space<vmem>>, %arg2: memref<128x256xbf16, #tpu.memory_space<vmem>>, %arg3: memref<1x256xbf16, #tpu.memory_space<vmem>>, %arg4: memref<256x128xbf16, #tpu.memory_space<vmem>>, %arg5: memref<1x128xbf16, #tpu.memory_space<vmem>>, %arg6: memref<1x128xf32, #tpu.memory_space<vmem>>, %arg7: memref<1x128xf32, #tpu.memory_space<vmem>>, %arg8: memref<1x8x128xbf16, #tpu.memory_space<vmem>>) attributes {dimension_semantics = [#tpu.dimension_semantics<parallel>], iteration_bounds = array<i64: 2>, scalar_prefetch = 0 : i64, scratch_operands = 0 : i64, tpu.core_type = #tpu.core_type<tc>, window_params = [{transform_indices = @transform_0, window_bounds = array<i64: 1, 8, 128>}, {pipeline_mode = #tpu.pipeline_mode<synchronous>, transform_indices = @transform_1, window_bounds = array<i64: 128, 256>}, {pipeline_mode = #tpu.pipeline_mode<synchronous>, transform_indices = @transform_2, window_bounds = array<i64: 1, 256>}, {pipeline_mode = #tpu.pipeline_mode<synchronous>, transform_indices = @transform_3, window_bounds = array<i64: 256, 128>}, {pipeline_mode = #tpu.pipeline_mode<synchronous>, transform_indices = @transform_4, window_bounds = array<i64: 1, 128>}, {pipeline_mode = #tpu.pipeline_mode<synchronous>, transform_indices = @transform_5, window_bounds = array<i64: 1, 128>}, {pipeline_mode = #tpu.pipeline_mode<synchronous>, transform_indices = @transform_6, window_bounds = array<i64: 1, 128>}, {transform_indices = @transform_7, window_bounds = array<i64: 1, 8, 128>}]} {
    %c0 = arith.constant 0 : index
    %c0_0 = arith.constant 0 : index
    %c0_1 = arith.constant 0 : index
    %0 = vector.load %arg1[%c0, %c0_0, %c0_1] : memref<1x8x128xbf16, #tpu.memory_space<vmem>>, vector<1x8x128xbf16>
    %1 = vector.shape_cast %0 : vector<1x8x128xbf16> to vector<8x128xbf16>
    %c0_2 = arith.constant 0 : index
    %c0_3 = arith.constant 0 : index
    %2 = vector.load %arg2[%c0_2, %c0_3] : memref<128x256xbf16, #tpu.memory_space<vmem>>, vector<128x256xbf16>
    %cst = arith.constant dense<0.000000e+00> : vector<8x256xf32>
    %3 = tpu.matmul %1, %2, %cst {dimension_numbers = #tpu.dot_dimension_numbers<[1], [0], [0], [1], [0, 0, 1, 1], [], []>} : vector<8x128xbf16>, vector<128x256xbf16>, vector<8x256xf32> -> vector<8x256xf32>
    %c0_4 = arith.constant 0 : index
    %c0_5 = arith.constant 0 : index
    %4 = vector.load %arg3[%c0_4, %c0_5] : memref<1x256xbf16, #tpu.memory_space<vmem>>, vector<1x256xbf16>
    %5 = arith.extf %4 : vector<1x256xbf16> to vector<1x256xf32>
    %6 = vector.broadcast %5 : vector<1x256xf32> to vector<8x256xf32>
    %7 = arith.addf %3, %6 : vector<8x256xf32>
    %cst_6 = arith.constant 0.000000e+00 : f32
    %8 = vector.broadcast %cst_6 : f32 to vector<8x256xf32>
    %9 = arith.maximumf %7, %8 : vector<8x256xf32>
    %10 = arith.truncf %9 : vector<8x256xf32> to vector<8x256xbf16>
    %c0_7 = arith.constant 0 : index
    %c0_8 = arith.constant 0 : index
    %11 = vector.load %arg4[%c0_7, %c0_8] : memref<256x128xbf16, #tpu.memory_space<vmem>>, vector<256x128xbf16>
    %cst_9 = arith.constant dense<0.000000e+00> : vector<8x128xf32>
    %12 = tpu.matmul %10, %11, %cst_9 {dimension_numbers = #tpu.dot_dimension_numbers<[1], [0], [0], [1], [0, 0, 1, 1], [], []>} : vector<8x256xbf16>, vector<256x128xbf16>, vector<8x128xf32> -> vector<8x128xf32>
    %c0_10 = arith.constant 0 : index
    %c0_11 = arith.constant 0 : index
    %13 = vector.load %arg5[%c0_10, %c0_11] : memref<1x128xbf16, #tpu.memory_space<vmem>>, vector<1x128xbf16>
    %14 = arith.extf %13 : vector<1x128xbf16> to vector<1x128xf32>
    %15 = vector.broadcast %14 : vector<1x128xf32> to vector<8x128xf32>
    %16 = arith.addf %12, %15 : vector<8x128xf32>
    %17 = arith.extf %1 : vector<8x128xbf16> to vector<8x128xf32>
    %18 = arith.addf %17, %16 : vector<8x128xf32>
    %c0_12 = arith.constant 0 : index
    %c0_13 = arith.constant 0 : index
    %19 = vector.load %arg6[%c0_12, %c0_13] : memref<1x128xf32, #tpu.memory_space<vmem>>, vector<1x128xf32>
    %c0_14 = arith.constant 0 : index
    %c0_15 = arith.constant 0 : index
    %20 = vector.load %arg7[%c0_14, %c0_15] : memref<1x128xf32, #tpu.memory_space<vmem>>, vector<1x128xf32>
    %cst_16 = arith.constant dense<0.000000e+00> : vector<8xf32>
    %21 = vector.multi_reduction <add>, %18, %cst_16 [1] : vector<8x128xf32> to vector<8xf32>
    %22 = vector.shape_cast %21 : vector<8xf32> to vector<8x1xf32>
    %cst_17 = arith.constant 1.280000e+02 : f32
    %23 = vector.broadcast %cst_17 : f32 to vector<8x1xf32>
    %24 = arith.divf %22, %23 : vector<8x1xf32>
    %25 = vector.broadcast %24 : vector<8x1xf32> to vector<8x128xf32>
    %26 = arith.subf %18, %25 : vector<8x128xf32>
    %27 = arith.mulf %26, %26 : vector<8x128xf32>
    %cst_18 = arith.constant dense<0.000000e+00> : vector<8xf32>
    %28 = vector.multi_reduction <add>, %27, %cst_18 [1] : vector<8x128xf32> to vector<8xf32>
    %29 = vector.shape_cast %28 : vector<8xf32> to vector<8x1xf32>
    %cst_19 = arith.constant 1.280000e+02 : f32
    %30 = vector.broadcast %cst_19 : f32 to vector<8x1xf32>
    %31 = arith.divf %29, %30 : vector<8x1xf32>
    %32 = vector.broadcast %24 : vector<8x1xf32> to vector<8x128xf32>
    %33 = arith.subf %18, %32 : vector<8x128xf32>
    %cst_20 = arith.constant 9.99999974E-6 : f32
    %34 = vector.broadcast %cst_20 : f32 to vector<8x1xf32>
    %35 = arith.addf %31, %34 : vector<8x1xf32>
    %36 = math.rsqrt %35 : vector<8x1xf32>
    %37 = vector.broadcast %36 : vector<8x1xf32> to vector<8x128xf32>
    %38 = arith.mulf %33, %37 : vector<8x128xf32>
    %39 = vector.broadcast %19 : vector<1x128xf32> to vector<8x128xf32>
    %40 = arith.mulf %38, %39 : vector<8x128xf32>
    %41 = vector.broadcast %20 : vector<1x128xf32> to vector<8x128xf32>
    %42 = arith.addf %40, %41 : vector<8x128xf32>
    %43 = arith.truncf %42 : vector<8x128xf32> to vector<8x128xbf16>
    %c0_21 = arith.constant 0 : index
    %c0_22 = arith.constant 0 : index
    %c0_23 = arith.constant 0 : index
    %44 = vector.load %arg8[%c0_21, %c0_22, %c0_23] : memref<1x8x128xbf16, #tpu.memory_space<vmem>>, vector<1x8x128xbf16>
    %45 = vector.shape_cast %44 : vector<1x8x128xbf16> to vector<8x128xbf16>
    %46 = vector.shape_cast %43 : vector<8x128xbf16> to vector<1x8x128xbf16>
    tpu.vector_store %arg8[%c0_21, %c0_22, %c0_23], %46 {strides = array<i32>} : memref<1x8x128xbf16, #tpu.memory_space<vmem>>, vector<1x8x128xbf16>,
    return
  }
  func.func @transform_0(%arg0: i32) -> (i32, i32, i32) {
    %c0_i32 = arith.constant 0 : i32
    %c0_i32_0 = arith.constant 0 : i32
    %c0_i32_1 = arith.constant 0 : i32
    return %arg0, %c0_i32, %c0_i32_0 : i32, i32, i32
  }
  func.func @transform_1(%arg0: i32) -> (i32, i32) {
    %c0_i32 = arith.constant 0 : i32
    %c0_i32_0 = arith.constant 0 : i32
    %c0_i32_1 = arith.constant 0 : i32
    return %c0_i32, %c0_i32_0 : i32, i32
  }
  func.func @transform_2(%arg0: i32) -> (i32, i32) {
    %c0_i32 = arith.constant 0 : i32
    %c0_i32_0 = arith.constant 0 : i32
    %c0_i32_1 = arith.constant 0 : i32
    return %c0_i32, %c0_i32_0 : i32, i32
  }
  func.func @transform_3(%arg0: i32) -> (i32, i32) {
    %c0_i32 = arith.constant 0 : i32
    %c0_i32_0 = arith.constant 0 : i32
    %c0_i32_1 = arith.constant 0 : i32
    return %c0_i32, %c0_i32_0 : i32, i32
  }
  func.func @transform_4(%arg0: i32) -> (i32, i32) {
    %c0_i32 = arith.constant 0 : i32
    %c0_i32_0 = arith.constant 0 : i32
    %c0_i32_1 = arith.constant 0 : i32
    return %c0_i32, %c0_i32_0 : i32, i32
  }
  func.func @transform_5(%arg0: i32) -> (i32, i32) {
    %c0_i32 = arith.constant 0 : i32
    %c0_i32_0 = arith.constant 0 : i32
    %c0_i32_1 = arith.constant 0 : i32
    return %c0_i32, %c0_i32_0 : i32, i32
  }
  func.func @transform_6(%arg0: i32) -> (i32, i32) {
    %c0_i32 = arith.constant 0 : i32
    %c0_i32_0 = arith.constant 0 : i32
    %c0_i32_1 = arith.constant 0 : i32
    return %c0_i32, %c0_i32_0 : i32, i32
  }
  func.func @transform_7(%arg0: i32) -> (i32, i32, i32) {
    %c0_i32 = arith.constant 0 : i32
    %c0_i32_0 = arith.constant 0 : i32
    %c0_i32_1 = arith.constant 0 : i32
    return %arg0, %c0_i32, %c0_i32_0 : i32, i32, i32
  }
}

module attributes {stable_mosaic.version = 11 : i64} {
  func.func @_linear_softmax_kernel(%arg0: i32, %arg1: memref<1x8x128xbf16, #tpu.memory_space<vmem>>, %arg2: memref<128x128xbf16, #tpu.memory_space<vmem>>, %arg3: memref<1x128xbf16, #tpu.memory_space<vmem>>, %arg4: memref<1x8x128xf32, #tpu.memory_space<vmem>>) attributes {dimension_semantics = [#tpu.dimension_semantics<parallel>], iteration_bounds = array<i64: 2>, scalar_prefetch = 0 : i64, scratch_operands = 0 : i64, tpu.core_type = #tpu.core_type<tc>, window_params = [{transform_indices = @transform_0, window_bounds = array<i64: 1, 8, 128>}, {pipeline_mode = #tpu.pipeline_mode<synchronous>, transform_indices = @transform_1, window_bounds = array<i64: 128, 128>}, {pipeline_mode = #tpu.pipeline_mode<synchronous>, transform_indices = @transform_2, window_bounds = array<i64: 1, 128>}, {transform_indices = @transform_3, window_bounds = array<i64: 1, 8, 128>}]} {
    %c0 = arith.constant 0 : index
    %c0_0 = arith.constant 0 : index
    %c0_1 = arith.constant 0 : index
    %0 = vector.load %arg1[%c0, %c0_0, %c0_1] : memref<1x8x128xbf16, #tpu.memory_space<vmem>>, vector<1x8x128xbf16>
    %1 = vector.shape_cast %0 : vector<1x8x128xbf16> to vector<8x128xbf16>
    %c0_2 = arith.constant 0 : index
    %c0_3 = arith.constant 0 : index
    %2 = vector.load %arg2[%c0_2, %c0_3] : memref<128x128xbf16, #tpu.memory_space<vmem>>, vector<128x128xbf16>
    %cst = arith.constant dense<0.000000e+00> : vector<8x128xf32>
    %3 = tpu.matmul %1, %2, %cst {dimension_numbers = #tpu.dot_dimension_numbers<[1], [0], [0], [1], [0, 0, 1, 1], [], []>} : vector<8x128xbf16>, vector<128x128xbf16>, vector<8x128xf32> -> vector<8x128xf32>
    %c0_4 = arith.constant 0 : index
    %c0_5 = arith.constant 0 : index
    %4 = vector.load %arg3[%c0_4, %c0_5] : memref<1x128xbf16, #tpu.memory_space<vmem>>, vector<1x128xbf16>
    %5 = arith.extf %4 : vector<1x128xbf16> to vector<1x128xf32>
    %6 = vector.broadcast %5 : vector<1x128xf32> to vector<8x128xf32>
    %7 = arith.addf %3, %6 : vector<8x128xf32>
    %cst_6 = arith.constant dense<0xFF800000> : vector<8xf32>
    %8 = vector.multi_reduction <maximumf>, %7, %cst_6 [1] : vector<8x128xf32> to vector<8xf32>
    %9 = vector.shape_cast %8 : vector<8xf32> to vector<8x1xf32>
    %10 = vector.broadcast %9 : vector<8x1xf32> to vector<8x128xf32>
    %11 = arith.subf %7, %10 : vector<8x128xf32>
    %12 = math.exp %11 : vector<8x128xf32>
    %cst_7 = arith.constant dense<0.000000e+00> : vector<8xf32>
    %13 = vector.multi_reduction <add>, %12, %cst_7 [1] : vector<8x128xf32> to vector<8xf32>
    %14 = vector.shape_cast %13 : vector<8xf32> to vector<8x1xf32>
    %15 = vector.broadcast %14 : vector<8x1xf32> to vector<8x128xf32>
    %16 = arith.divf %12, %15 : vector<8x128xf32>
    %c0_8 = arith.constant 0 : index
    %c0_9 = arith.constant 0 : index
    %c0_10 = arith.constant 0 : index
    %17 = vector.load %arg4[%c0_8, %c0_9, %c0_10] : memref<1x8x128xf32, #tpu.memory_space<vmem>>, vector<1x8x128xf32>
    %18 = vector.shape_cast %17 : vector<1x8x128xf32> to vector<8x128xf32>
    %19 = vector.shape_cast %16 : vector<8x128xf32> to vector<1x8x128xf32>
    tpu.vector_store %arg4[%c0_8, %c0_9, %c0_10], %19 {strides = array<i32>} : memref<1x8x128xf32, #tpu.memory_space<vmem>>, vector<1x8x128xf32>,
    return
  }
  func.func @transform_0(%arg0: i32) -> (i32, i32, i32) {
    %c0_i32 = arith.constant 0 : i32
    %c0_i32_0 = arith.constant 0 : i32
    %c0_i32_1 = arith.constant 0 : i32
    return %arg0, %c0_i32, %c0_i32_0 : i32, i32, i32
  }
  func.func @transform_1(%arg0: i32) -> (i32, i32) {
    %c0_i32 = arith.constant 0 : i32
    %c0_i32_0 = arith.constant 0 : i32
    %c0_i32_1 = arith.constant 0 : i32
    return %c0_i32, %c0_i32_0 : i32, i32
  }
  func.func @transform_2(%arg0: i32) -> (i32, i32) {
    %c0_i32 = arith.constant 0 : i32
    %c0_i32_0 = arith.constant 0 : i32
    %c0_i32_1 = arith.constant 0 : i32
    return %c0_i32, %c0_i32_0 : i32, i32
  }
  func.func @transform_3(%arg0: i32) -> (i32, i32, i32) {
    %c0_i32 = arith.constant 0 : i32
    %c0_i32_0 = arith.constant 0 : i32
    %c0_i32_1 = arith.constant 0 : i32
    return %arg0, %c0_i32, %c0_i32_0 : i32, i32, i32
  }
}

</mosaic_0001>

<bundles_post_ra>
// kernel: decoder_forward.13
= control target key start
LH: loop header
LB: loop body
LE: loop exit
PB: predicated region body
PF: predicated region fallthrough
CT: control target
= control target key end

     0   :  { %8 = vsyncpa [#allocation3], 0  ;;  %s701_s0 = inlined_call_operand.vmem [shape: bf16[2,8,128], index: 0, kind: input, shape index: {}]   ;;  %s702_s1 = inlined_call_operand.hbm [shape: bf16[128,128], index: 1, kind: input, shape index: {}]   ;;  %s703_s2 = inlined_call_operand.vmem [shape: bf16[1,128], index: 2, kind: input, shape index: {}]   ;;  %s704_s3 = inlined_call_operand.hbm [shape: f32[2,8,128], index: 3, kind: output, shape index: {}]  }
   0x1   :  { %9 = vsyncpa [#allocation4], 0 }
   0x2   :  { %11 = vsyncpa [#allocation4 + $0x1], 0  ;;  %s603_s12 = smov 0   ;;  %s605_s13 = smov 0  }
   0x3   :  { %s607_s14 = smov 0   ;;  %s609_s15 = smov 0  }
   0x4 LB: > { %s624_s16 = sadd.s32 4294967295, %s578_s15   ;;  %s374_s17 = sadd.s32 4294967294, %s578_s15   ;;  %s578_s15 = sphi %s609_s15, %s710_s15   ;;  %s574_s14 = sphi %s607_s14, %s709_s14   ;;  %s570_s13 = sphi %s605_s13, %s708_s13   ;;  %s566_s12 = sphi %s603_s12, %s707_s12  }
   0x5   : > { %s628_s18 = sadd.s32 1, %s578_s15   ;;  %s92_s19 = sadd.s32 1, %s574_s14 }
   0x6   : > { %s89_s20 = ssub.s32 %s578_s15, %s628_s18  ;;  %p102_p0 = scmp.ne.s32.totalorder %s574_s14, %s570_s13 }
   0x7   : > { %p90_p1 = scmp.eq.s32.totalorder %s89_s20, 0  ;;  %p103_p2 = scmp.eq.s32.totalorder %s624_s16, 1 }
   0x8   : > { %p108_p3 = scmp.ne.s32.totalorder %s570_s13, %s566_s12  ;;  %p109_p4 = scmp.eq.s32.totalorder %s374_s17, 1 }
   0x9   : > { %s639_s21 = scalar_select %p90_p1, %s574_s14, %s92_s19  }
   0xa   : > { %p641_p5 = por %p103_p2, %p102_p0  ;;  %p645_p6 = por %p109_p4, %p108_p3 }
   0xb   : > { %p375_p7 = scmp.ge.s32.totalorder %s578_s15, 1  ;;  %p116_p8 = scmp.lt.s32.totalorder %s578_s15, 3 }
   0xc   : > { %p440_p9 = scmp.eq.s32.totalorder %s624_s16, 0  ;;  %s127_s26 = sshll.u32 %s702_s1, 4  ;;  %s128_s26 = int_to_ptr.hbm [resolvable:$true] %s127_s26 }
   0xd   : > { %p117_p10 = pnand %p375_p7, %p116_p8  ;;  %s580_s27 = smov [#allocation2]  }
   0xe   : > { %s129_s28 = sshll.u32 %s580_s27, 4  ;;  %s581_s29 = smov 64   ;;  %s130_s28 = int_to_ptr.vmem [resolvable:$true] %s129_s28 }
   0xf   : > { %p432_p11 = pneg %p117_p10  ;;  %s582_s30 = smov 4  }
  0x10   : > { %155 = sbr.rel (%p117_p10) target bundleno = 447 (0x1bf), region = 32 }
  0x11   : > { %p433_p12 = pnand %p440_p9, %p432_p11 }
  0x13   : > { %435 = dma.hbm_to_vmem [thread:$0]  (!%p433_p12), %s128_s26, 1024, %s130_s28, [#allocation3], %s581_s29, %s581_s29, %s582_s30  }
  0x15   : > { %557 = dma.done.wait (%p440_p9), [#allocation3], 1024  }
  0x16   : > { %559 = vsyncadd (%p440_p9), [#allocation3], 4294966272  ;;  %v425_v0 = vld [vmem:[#allocation2 + $0x38] sm:$0xff]  ;;  %v424_v1 = vld [vmem:[#allocation2 + $0x30] sm:$0xff]  ;;  %p179_p13 = scmp.lt.s32.totalorder %s624_s16, 1  ;;  %s176_s11 = sand.u32 1, %s570_s13  }
  0x17   : > { %251 = vmatpush.bf16.msra.mxu0 %v425_v0  ;;  %v423_v2 = vld [vmem:[#allocation2 + $0x28] sm:$0xff]  ;;  %v422_v3 = vld [vmem:[#allocation2 + $0x20] sm:$0xff]  ;;  %v421_v4 = vld [vmem:[#allocation2 + $0x18] sm:$0xff]  ;;  %s380_s17 = sshll.u32 %s176_s11, 3  ;;  %s415_s19 = sshll.u32 %s624_s16, 3 }
  0x18   : > { %v420_v5 = vld [vmem:[#allocation2 + $0x10] sm:$0xff]  ;;  %s180_s4 = scalar_select %p179_p13, %s624_s16, 1  ;;  %v419_v6 = vld [vmem:[#allocation2 + $0x8] sm:$0xff]  ;;  %v418_v7 = vld [vmem:[#allocation2] sm:$0xff] }
  0x19   : > { %v200_v9 = vld [vmem:[%s703_s2] sm:$0x1]  ;;  %s298_s25 = scalar_lea.hbm %s704_s3, %s415_s19  ;;  %s178_s26 = scalar_lea.vmem [#allocation5], %s380_s17 }
  0x1a   : > { %s381_s5 = sshll.u32 %s180_s4, 2  ;;  %v201_v10 = vunpack.c.l.bf16 %v200_v9  ;;  %s300_s27 = sshll.u32 %s178_s26, 4  ;;  %s301_s27 = int_to_ptr.vmem [resolvable:$true] %s300_s27 }
  0x1b   : > { %252 = vmatpush.bf16.msra.mxu0 %v424_v1  ;;  %s182_s8 = scalar_lea.vmem %s701_s0, %s381_s5  ;;  %s302_s28 = sshll.u32 %s298_s25, 4  ;;  %s303_s28 = int_to_ptr.hbm [resolvable:$true] %s302_s28 }
  0x1c   : > { %v183_v8 = vld [vmem:[%s182_s8] sm:$0xf]  ;;  %v202_v11 = vperm.slane %v201_v10, 0  ;;  %s288_s16 = scalar_lea.sflag [#allocation4], %s176_s11  ;;  %s526_s29 = sshra.s32 %s303_s28, 4  ;;  %s527_s29 = int_to_ptr.hbm [resolvable:$true] %s526_s29 }
  0x1d   : > { %s528_s30 = scalar_lea.hbm %s527_s29, 8  ;;  %s532_s6 = scalar_lea.hbm %s704_s3, 16 }
  0x1e   : > { %p529_p0 = scmp.ne.s32.totalorder %s527_s29, %s528_s30  ;;  %p533_p3 = scmp.lt.s32.totalorder %s527_s29, %s704_s3 }
  0x1f   : > { %253 = vmatpush.bf16.msra.mxu0 %v423_v2  ;;  %p534_p4 = scmp.lt.s32.totalorder %s532_s6, %s528_s30 }
  0x20   : > { %p530_p1 = pnand %p529_p0, %p641_p5 }
  0x21   : > { %p535_p7 = por %p534_p4, %p533_p3 }
  0x22   : > { %p531_p2 = pneg %p530_p1 }
  0x23   : > { %254 = vmatpush.bf16.msra.mxu0 %v422_v3 }
  0x24   : > { %p536_p8 = pnand %p535_p7, %p531_p2 }
  0x27   : > { %255 = vmatpush.bf16.msra.mxu0 %v421_v4 }
  0x2b   : > { %256 = vmatpush.bf16.msra.mxu0 %v420_v5 }
  0x2f   : > { %257 = vmatpush.bf16.msra.mxu0 %v419_v6 }
  0x33   : > { %258 = vmatpush.bf16.msra.mxu0 %v418_v7 }
  0x36   : > { %259 = vmatmul.bf16.vlgmr.msra.gmra.mxu0 %v183_v8 }
  0xb3   : > { %v260_v12 = vpop.f32.mrf.mxu0 }
  0xb4   : > { %v261_v13 = vadd.f32 %v260_v12, %v202_v11 }
  0xb6   : > { %264 = vmax.xlane.f32.xlu0 %v261_v13 }
  0xbb   : > { %v262_v14 = vpop.f32.mrf.mxu0 }
 0x129   : > { %v265_v15 = vpop.xlane.xlu0 %264 }
 0x12a   : > { %v266_v16 = vsub.f32 %v261_v13, %v265_v15 }
 0x12c   : > { %v267_v17 = vmul.f32 1.442695, %v266_v16 }
 0x12e   : > { %478 = vpow2.f32 %v267_v17 }
 0x134   : > { %v479_v18 = vpop.eup %478 }
 0x135   : > { %269 = vadd.xlane.f32.xlu0 %v479_v18 }
 0x1a8   : > { %v270_v19 = vpop.xlane.xlu0 %269 }
 0x1a9   : > { %480 = vrcp.f32 %v270_v19  ;;  %v282_v23 = vand.u32 2147483648, %v270_v19  ;;  %v280_v25 = vand.u32 2147483647, %v270_v19  ;;  %vm276_vm1 = vweird.f32 %v270_v19 }
 0x1ab   : > { %v283_v27 = vor.u32 1.1754944e-38, %v282_v23  ;;  %vm281_vm3 = vcmp.eq.f32.partialorder %v280_v25, 8.507059e+37 }
 0x1af   : > { %v481_v20 = vpop.eup %480 }
 0x1b0   : > { %v272_v21 = vmul.f32 %v481_v20, %v270_v19  ;;  %vm277_vm0 = vweird.f32 %v481_v20 }
 0x1b1   : > { %vm278_vm2 = vmor %vm276_vm1, %vm277_vm0 }
 0x1b2   : > { %v273_v22 = vsub.f32 1.0, %v272_v21 }
 0x1b4   : > { %v274_v24 = vmul.f32 %v481_v20, %v273_v22 }
 0x1b6   : > { %v275_v26 = vadd.f32 %v481_v20, %v274_v24 }
 0x1b8   : > { %v279_v28 = vsel %vm278_vm2, %v481_v20, %v275_v26 }
 0x1b9   : > { %v284_v29 = vsel %vm281_vm3, %v283_v27, %v279_v28 }
 0x1ba   : > { %v285_v30 = vmul.f32 %v479_v18, %v284_v29 }
 0x1bc   : > { %286 = vst [vmem:[%s178_s26] sm:$0xff] %v285_v30 }
 0x1bd   : > { %539 = shalt.err (!%p536_p8)
}
 0x1be   : > { %430 = dma.vmem_to_hbm [thread:$0]  (%p641_p5), %s301_s27, 128, %s303_s28, %s288_s16  }
 0x1bf PF: > { %p442_p9 = scmp.ge.s32.totalorder %s578_s15, 2  ;;  %s314_s9 = sand.u32 1, %s566_s12  }
 0x1c0   : > { %s315_s10 = scalar_lea.sflag [#allocation4], %s314_s9 }
 0x1c1   : > { %p437_p10 = pnand %p442_p9, %p645_p6 }
 0x1c3   : > { %p438_p11 = pneg %p437_p10 }
 0x1c5   : > { %561 = dma.done.wait (%p438_p11), %s315_s10, 128  }
 0x1c6   : > { %563 = vsyncadd (%p438_p11), %s315_s10, 4294967168  ;;  %p14_p12 = scmp.ge.s32.totalorder %s628_s18, 4   ;;  %s707_s12 = smov %s570_s13 }
 0x1c7   : > { %s708_s13 = smov %s574_s14  ;;  %s709_s14 = smov %s639_s21 }
 0x1c8   : > { %s710_s15 = smov %s628_s18  ;;  %16 = sbr.rel (!%p14_p12) target bundleno = 4 (0x4), region = 72 }
 0x1cd   :  { %321 = vsyncpa [#allocation3], 1 }
 0x1ce   :  { %323 = vsyncpa [#allocation3 + $0x1], 1 }
 0x1cf   :  { %324 = vsyncpa [#allocation4], 1 }
 0x1d0   :  { %326 = vsyncpa [#allocation4 + $0x1], 1 }

// kernel: decoder_forward.9
= control target key start
LH: loop header
LB: loop body
LE: loop exit
PB: predicated region body
PF: predicated region fallthrough
CT: control target
= control target key end

     0   :  { %12 = vsyncpa [#allocation3], 0  ;;  %s1118_s0 = inlined_call_operand.vmem [shape: bf16[2,8,128], index: 0, kind: input, shape index: {}]   ;;  %s1119_s1 = inlined_call_operand.hbm [shape: bf16[128,256], index: 1, kind: input, shape index: {}]   ;;  %s1120_s2 = inlined_call_operand.vmem [shape: bf16[1,256], index: 2, kind: input, shape index: {}]   ;;  %s1121_s3 = inlined_call_operand.hbm [shape: bf16[256,128], index: 3, kind: input, shape index: {}]   ;;  %s1122_s4 = inlined_call_operand.vmem [shape: bf16[1,128], index: 4, kind: input, shape index: {}]   ;;  %s1123_s5 = inlined_call_operand.vmem [shape: f32[1,128], index: 5, kind: input, shape index: {}]   ;;  %s1124_s6 = inlined_call_operand.vmem [shape: f32[1,128], index: 6, kind: input, shape index: {}]   ;;  %s1125_s7 = inlined_call_operand.vmem [shape: bf16[2,8,128], index: 7, kind: output, shape index: {}]  }
   0x1   :  { %13 = vsyncpa [#allocation5], 0  ;;  %s1053_s24 = smov 0  }
   0x2 LB: > { %s213_s27 = sshll.u32 %s1119_s1, 4  ;;  %s1062_s28 = sadd.s32 4294967295, %s1004_s24   ;;  %s1004_s24 = sphi %s1053_s24, %s19_s24   ;;  %s214_s27 = int_to_ptr.hbm [resolvable:$true] %s213_s27 }
   0x3   : > { %p719_p0 = scmp.ge.s32.totalorder %s1004_s24, 1  ;;  %p202_p1 = scmp.lt.s32.totalorder %s1004_s24, 3 }
   0x4   : > { %p905_p2 = scmp.eq.s32.totalorder %s1062_s28, 0  ;;  %s1006_s30 = smov [#allocation2]  }
   0x5   : > { %p1067_p3 = pnand %p719_p0, %p202_p1  ;;  %s215_s8 = sshll.u32 %s1006_s30, 4  ;;  %s216_s8 = int_to_ptr.vmem [resolvable:$true] %s215_s8 }
   0x6   : > { %s230_s11 = sshll.u32 %s1121_s3, 4  ;;  %s1007_s12 = smov [#allocation4]   ;;  %s231_s11 = int_to_ptr.hbm [resolvable:$true] %s230_s11 }
   0x7   : > { %p898_p4 = pneg %p1067_p3  ;;  %s232_s13 = sshll.u32 %s1007_s12, 4  ;;  %s233_s13 = int_to_ptr.vmem [resolvable:$true] %s232_s13 }
   0x8   : > { %s1008_s14 = smov 128   ;;  %s1009_s15 = smov 8  }
   0x9   : > { %p899_p5 = pnand %p905_p2, %p898_p4  ;;  %s1010_s16 = smov 64  }
   0xa   : > { %s1011_s17 = smov 4   ;;  %264 = sbr.rel (%p1067_p3) target bundleno = 591 (0x24f), region = 48 }
   0xb   : > { %901 = dma.hbm_to_vmem [thread:$0]  (!%p899_p5), %s214_s27, 2048, %s216_s8, [#allocation3], %s1008_s14, %s1008_s14, %s1009_s15  }
   0xc   : > { %904 = dma.hbm_to_vmem [thread:$0]  (!%p899_p5), %s231_s11, 2048, %s233_s13, [#allocation5], %s1010_s16, %s1010_s16, %s1011_s17  }
   0xf   : > { %995 = dma.done.wait (%p905_p2), [#allocation3], 2048  }
  0x10   : > { %997 = vsyncadd (%p905_p2), [#allocation3], 4294965248 }
  0x11   : > { %999 = dma.done.wait (%p905_p2), [#allocation5], 2048  }
  0x12   : > { %1001 = vsyncadd (%p905_p2), [#allocation5], 4294965248  ;;  %v786_v0 = vld [vmem:[#allocation2 + $0x70] sm:$0xf]  ;;  %v873_v1 = vld [vmem:[#allocation2 + $0x74] sm:$0xf0] }
  0x13   : > { %v872_v2 = vld [vmem:[#allocation2 + $0x74] sm:$0xf]  ;;  %v787_v3 = vor.u32 %v873_v1, %v786_v0  ;;  %v788_v4 = vld [vmem:[#allocation2 + $0x78] sm:$0xf0]  ;;  %v778_v5 = vld [vmem:[#allocation2 + $0x60] sm:$0xf] }
  0x14   : > { %v871_v6 = vld [vmem:[#allocation2 + $0x64] sm:$0xf0]  ;;  %v791_v7 = vor.u32 %v872_v2, %v788_v4  ;;  %v870_v8 = vld [vmem:[#allocation2 + $0x64] sm:$0xf]  ;;  %v780_v9 = vld [vmem:[#allocation2 + $0x68] sm:$0xf0] }
  0x15   : > { %414 = vmatpush.bf16.msra.mxu0 %v787_v3  ;;  %v779_v10 = vor.u32 %v871_v6, %v778_v5  ;;  %v783_v11 = vor.u32 %v870_v8, %v780_v9  ;;  %v770_v12 = vld [vmem:[#allocation2 + $0x50] sm:$0xf]  ;;  %v869_v13 = vld [vmem:[#allocation2 + $0x54] sm:$0xf0]  ;;  %v868_v14 = vld [vmem:[#allocation2 + $0x54] sm:$0xf] }
  0x16   : > { %427 = vmatpush.bf16.msra.mxu1 %v791_v7  ;;  %v772_v15 = vld [vmem:[#allocation2 + $0x58] sm:$0xf0]  ;;  %v771_v16 = vor.u32 %v869_v13, %v770_v12  ;;  %v762_v18 = vld [vmem:[#allocation2 + $0x40] sm:$0xf]  ;;  %v867_v19 = vld [vmem:[#allocation2 + $0x44] sm:$0xf0] }
  0x17   : > { %v775_v17 = vor.u32 %v868_v14, %v772_v15  ;;  %v866_v20 = vld [vmem:[#allocation2 + $0x44] sm:$0xf]  ;;  %v764_v21 = vld [vmem:[#allocation2 + $0x48] sm:$0xf0]  ;;  %v763_v22 = vor.u32 %v867_v19, %v762_v18  ;;  %v881_v23 = vld [vmem:[#allocation4 + $0x38] sm:$0xff]  ;;  %p300_p6 = scmp.lt.s32.totalorder %s1062_s28, 1 }
  0x18   : > { %v889_v24 = vld [vmem:[#allocation4 + $0x78] sm:$0xff]  ;;  %v767_v25 = vor.u32 %v866_v20, %v764_v21  ;;  %v754_v26 = vld [vmem:[#allocation2 + $0x30] sm:$0xf]  ;;  %v864_v28 = vld [vmem:[#allocation2 + $0x34] sm:$0xf]  ;;  %575 = vmatpush.bf16.msra.mxu2 %v881_v23 }
  0x19   : > { %415 = vmatpush.bf16.msra.mxu0 %v779_v10  ;;  %v865_v27 = vld [vmem:[#allocation2 + $0x34] sm:$0xf0]  ;;  %v756_v29 = vld [vmem:[#allocation2 + $0x38] sm:$0xf0]  ;;  %588 = vmatpush.bf16.msra.mxu3 %v889_v24  ;;  %v880_v30 = vld [vmem:[#allocation4 + $0x30] sm:$0xff]  ;;  %s1128_s28 = smov (!%p300_p6, %s1062_s28), 1 }
  0x1a   : > { %428 = vmatpush.bf16.msra.mxu1 %v783_v11  ;;  %v888_v31 = vld [vmem:[#allocation4 + $0x70] sm:$0xff]  ;;  %v755_v32 = vor.u32 %v865_v27, %v754_v26  ;;  %v759_v33 = vor.u32 %v864_v28, %v756_v29  ;;  %v746_v34 = vld [vmem:[#allocation2 + $0x20] sm:$0xf]  ;;  %v863_v35 = vld [vmem:[#allocation2 + $0x24] sm:$0xf0]  ;;  %s726_s18 = sshll.u32 %s1128_s28, 2 }
  0x1b   : > { %v862_v36 = vld [vmem:[#allocation2 + $0x24] sm:$0xf]  ;;  %v748_v37 = vld [vmem:[#allocation2 + $0x28] sm:$0xf0]  ;;  %v747_v40 = vor.u32 %v863_v35, %v746_v34  ;;  %v738_v42 = vld [vmem:[#allocation2 + $0x10] sm:$0xf]  ;;  %s303_s21 = scalar_lea.vmem %s1118_s0, %s726_s18  ;;  %s307_s11 = scalar_lea.vmem %s1125_s7, %s726_s18 }
  0x1c   : > { %576 = vmatpush.bf16.msra.mxu2 %v880_v30  ;;  %v879_v38 = vld [vmem:[#allocation4 + $0x28] sm:$0xff]  ;;  %v751_v41 = vor.u32 %v862_v36, %v748_v37  ;;  %v861_v43 = vld [vmem:[#allocation2 + $0x14] sm:$0xf0]  ;;  %v860_v44 = vld [vmem:[#allocation2 + $0x14] sm:$0xf]  ;;  %v1012_v28 = vmov 128.0  }
  0x1d   : > { %416 = vmatpush.bf16.msra.mxu0 %v771_v16  ;;  %589 = vmatpush.bf16.msra.mxu3 %v888_v31  ;;  %v887_v39 = vld [vmem:[#allocation4 + $0x68] sm:$0xff]  ;;  %v740_v45 = vld [vmem:[#allocation2 + $0x18] sm:$0xf0]  ;;  %v878_v46 = vld [vmem:[#allocation4 + $0x20] sm:$0xff]  ;;  %v739_v48 = vor.u32 %v861_v43, %v738_v42  ;;  %926 = vrcp.f32 %v1012_v28 }
  0x1e   : > { %429 = vmatpush.bf16.msra.mxu1 %v775_v17  ;;  %v886_v47 = vld [vmem:[#allocation4 + $0x60] sm:$0xff]  ;;  %v743_v49 = vor.u32 %v860_v44, %v740_v45  ;;  %v859_v51 = vld [vmem:[#allocation2 + $0x4] sm:$0xf0]  ;;  %v732_v53 = vld [vmem:[#allocation2 + $0x8] sm:$0xf0] }
  0x1f   : > { %v730_v50 = vld [vmem:[#allocation2] sm:$0xf]  ;;  %v858_v52 = vld [vmem:[#allocation2 + $0x4] sm:$0xf]  ;;  %v877_v54 = vld [vmem:[#allocation4 + $0x18] sm:$0xff] }
  0x20   : > { %577 = vmatpush.bf16.msra.mxu2 %v879_v38  ;;  %v885_v55 = vld [vmem:[#allocation4 + $0x58] sm:$0xff]  ;;  %v731_v56 = vor.u32 %v859_v51, %v730_v50  ;;  %v735_v57 = vor.u32 %v858_v52, %v732_v53  ;;  %v876_v58 = vld [vmem:[#allocation4 + $0x10] sm:$0xff]  ;;  %v308_v60 = vld [vmem:[%s303_s21] sm:$0xf] }
  0x21   : > { %417 = vmatpush.bf16.msra.mxu0 %v763_v22  ;;  %590 = vmatpush.bf16.msra.mxu3 %v887_v39  ;;  %v884_v59 = vld [vmem:[#allocation4 + $0x50] sm:$0xff]  ;;  %v875_v61 = vld [vmem:[#allocation4 + $0x8] sm:$0xff]  ;;  %v874_v63 = vld [vmem:[#allocation4] sm:$0xff]  ;;  %v601_v23 = vunpack.c.l.bf16 %v308_v60 }
  0x22   : > { %430 = vmatpush.bf16.msra.mxu1 %v767_v25  ;;  %v883_v62 = vld [vmem:[#allocation4 + $0x48] sm:$0xff]  ;;  %v882_v0 = vld [vmem:[#allocation4 + $0x40] sm:$0xff] }
  0x23   : > { %v325_v1 = vld [vmem:[%s1120_s2] sm:$0x3]  ;;  %v927_v29 = vpop.eup %926 }
  0x24   : > { %578 = vmatpush.bf16.msra.mxu2 %v878_v46  ;;  %v326_v2 = vunpack.c.l.bf16 %v325_v1  ;;  %v476_v17 = vld [vmem:[%s1122_s4] sm:$0x1]  ;;  %v608_v30 = vmul.f32 128.0, %v927_v29  ;;  %vm612_vm0 = vweird.f32 %v927_v29 }
  0x25   : > { %418 = vmatpush.bf16.msra.mxu0 %v755_v32  ;;  %591 = vmatpush.bf16.msra.mxu3 %v886_v47  ;;  %v477_v18 = vunpack.c.l.bf16 %v476_v17  ;;  %v925_v50 = vld [vmem:[%s1124_s6] ss:$0 sm:$0xff] }
  0x26   : > { %431 = vmatpush.bf16.msra.mxu1 %v759_v33  ;;  %v328_v3 = vperm.slane %v326_v2, 0  ;;  %v329_v4 = vperm.slane %v326_v2, 2  ;;  %v609_v31 = vsub.f32 1.0, %v608_v30 }
  0x27   : > { %v478_v19 = vperm.slane %v477_v18, 0 }
  0x28   : > { %579 = vmatpush.bf16.msra.mxu2 %v877_v54  ;;  %v332_v5 = vperm.slane %v328_v3, 0  ;;  %v333_v6 = vperm.slane %v329_v4, 0  ;;  %v610_v32 = vmul.f32 %v927_v29, %v609_v31 }
  0x29   : > { %419 = vmatpush.bf16.msra.mxu0 %v747_v40  ;;  %592 = vmatpush.bf16.msra.mxu3 %v885_v55 }
  0x2a   : > { %432 = vmatpush.bf16.msra.mxu1 %v751_v41  ;;  %v611_v33 = vadd.f32 %v927_v29, %v610_v32 }
  0x2c   : > { %580 = vmatpush.bf16.msra.mxu2 %v876_v58  ;;  %v613_v34 = vsel %vm612_vm0, %v927_v29, %v611_v33 }
  0x2d   : > { %420 = vmatpush.bf16.msra.mxu0 %v739_v48  ;;  %593 = vmatpush.bf16.msra.mxu3 %v884_v59  ;;  %v924_v48 = vld [vmem:[%s1123_s5] ss:$0 sm:$0xff] }
  0x2e   : > { %433 = vmatpush.bf16.msra.mxu1 %v743_v49 }
  0x30   : > { %581 = vmatpush.bf16.msra.mxu2 %v875_v61 }
  0x31   : > { %421 = vmatpush.bf16.msra.mxu0 %v731_v56  ;;  %594 = vmatpush.bf16.msra.mxu3 %v883_v62 }
  0x32   : > { %434 = vmatpush.bf16.msra.mxu1 %v735_v57 }
  0x34   : > { %422 = vmatmul.bf16.vlgmr.msra.gmra.mxu0 %v308_v60  ;;  %582 = vmatpush.bf16.msra.mxu2 %v874_v63 }
  0x35   : > { %435 = vmatmul.bf16.vlgmr.msra.gmra.mxu1 %v308_v60  ;;  %595 = vmatpush.bf16.msra.mxu3 %v882_v0 }
  0xb1   : > { %v423_v7 = vpop.f32.mrf.mxu0 }
  0xb2   : > { %v424_v8 = vadd.f32 %v423_v7, %v332_v5  ;;  %v436_v9 = vpop.f32.mrf.mxu1 }
  0xb3   : > { %v437_v10 = vadd.f32 %v436_v9, %v333_v6 }
  0xb4   : > { %v440_v11 = vmax.f32 %v424_v8, 0.0 }
  0xb5   : > { %v441_v12 = vmax.f32 %v437_v10, 0.0 }
  0xb6   : > { %v442_v13 = vpack.c.bf16 %v440_v11, %v440_v11 }
  0xb7   : > { %v443_v14 = vpack.c.bf16 %v441_v12, %v441_v12 }
  0xb8   : > { %583 = vmatmul.bf16.vlgmr.msra.gmra.mxu2 %v442_v13 }
  0xb9   : > { %596 = vmatmul.bf16.vlgmr.msra.gmra.mxu3 %v443_v14  ;;  %v425_v15 = vpop.f32.mrf.mxu0 }
  0xba   : > { %v438_v16 = vpop.f32.mrf.mxu1 }
 0x13b   : > { %v584_v20 = vpop.f32.mrf.mxu2 }
 0x13c   : > { %v585_v21 = vadd.f32 %v584_v20, %v478_v19  ;;  %v597_v22 = vpop.f32.mrf.mxu3 }
 0x13e   : > { %v598_v24 = vadd.f32 %v597_v22, %v585_v21 }
 0x140   : > { %v602_v25 = vadd.f32 %v601_v23, %v598_v24 }
 0x142   : > { %605 = vadd.xlane.f32.xlu0 %v602_v25 }
 0x143   : > { %v586_v26 = vpop.f32.mrf.mxu2 }
 0x144   : > { %v599_v27 = vpop.f32.mrf.mxu3 }
 0x1b5   : > { %v606_v35 = vpop.xlane.xlu0 %605 }
 0x1b6   : > { %v614_v36 = vmul.f32 %v613_v34, %v606_v35 }
 0x1b8   : > { %v615_v37 = vsub.f32 %v602_v25, %v614_v36 }
 0x1ba   : > { %v616_v38 = vmul.f32 %v615_v37, %v615_v37 }
 0x1bc   : > { %617 = vadd.xlane.f32.xlu0 %v616_v38 }
 0x22f   : > { %v618_v39 = vpop.xlane.xlu0 %617 }
 0x230   : > { %v619_v40 = vmul.f32 %v618_v39, %v613_v34 }
 0x232   : > { %v620_v41 = vadd.f32 1e-05, %v619_v40 }
 0x234   : > { %928 = vrsqrt.f32 %v620_v41  ;;  %vm627_vm2 = vweird.f32 %v620_v41 }
 0x23a   : > { %v929_v42 = vpop.eup %928 }
 0x23b   : > { %v622_v43 = vmul.f32 %v929_v42, %v620_v41  ;;  %vm628_vm1 = vweird.f32 %v929_v42 }
 0x23c   : > { %vm629_vm3 = vmor %vm627_vm2, %vm628_vm1 }
 0x23d   : > { %v623_v44 = vmul.f32 %v929_v42, %v622_v43 }
 0x23f   : > { %v624_v45 = vmul.f32 0.5, %v623_v44 }
 0x241   : > { %v625_v46 = vsub.f32 1.5, %v624_v45 }
 0x243   : > { %v626_v47 = vmul.f32 %v929_v42, %v625_v46 }
 0x245   : > { %v630_v49 = vsel %vm629_vm3, %v929_v42, %v626_v47 }
 0x246   : > { %v631_v51 = vmul.f32 %v630_v49, %v615_v37 }
 0x248   : > { %v635_v52 = vmul.f32 %v924_v48, %v631_v51 }
 0x24a   : > { %v639_v53 = vadd.f32 %v925_v50, %v635_v52 }
 0x24c   : > { %v640_v54 = vpack.c.bf16 %v639_v53, %v639_v53 }
 0x24e   : > { %641 = vst [vmem:[%s307_s11] sm:$0xf] %v640_v54 }
 0x24f PF: > { %s19_s24 = sadd.s32 1, %s1004_s24  }
 0x250   : > { %p16_p7 = scmp.ge.s32.totalorder %s19_s24, 4  }
 0x252   :  { %18 = sbr.rel (!%p16_p7) target bundleno = 2 (0x2), region = 87 }
 0x257   :  { %661 = vsyncpa [#allocation3], 1 }
 0x258   :  { %663 = vsyncpa [#allocation3 + $0x1], 1 }
 0x259   :  { %664 = vsyncpa [#allocation5], 1 }

// kernel: decoder_forward.8
= control target key start
LH: loop header
LB: loop body
LE: loop exit
PB: predicated region body
PF: predicated region fallthrough
CT: control target
= control target key end

     0   :  { %15 = vsyncpa [#allocation3], 0  ;;  %s1659_s0 = inlined_call_operand.vmem [shape: bf16[2,8,128], index: 0, kind: input, shape index: {}]   ;;  %s1660_s1 = inlined_call_operand.vmem [shape: bf16[2,8,128], index: 1, kind: input, shape index: {}]   ;;  %s1661_s2 = inlined_call_operand.hbm [shape: bf16[128,128], index: 2, kind: input, shape index: {}]   ;;  %s1662_s3 = inlined_call_operand.vmem [shape: bf16[1,128], index: 3, kind: input, shape index: {}]   ;;  %s1663_s4 = inlined_call_operand.hbm [shape: bf16[128,256], index: 4, kind: input, shape index: {}]   ;;  %s1664_s5 = inlined_call_operand.vmem [shape: bf16[1,256], index: 5, kind: input, shape index: {}]   ;;  %s1665_s6 = inlined_call_operand.hbm [shape: bf16[128,128], index: 6, kind: input, shape index: {}]   ;;  %s1666_s7 = inlined_call_operand.vmem [shape: bf16[1,128], index: 7, kind: input, shape index: {}]   ;;  %s1667_s8 = inlined_call_operand.vmem [shape: f32[1,128], index: 8, kind: input, shape index: {}]   ;;  %s1668_s9 = inlined_call_operand.vmem [shape: f32[1,128], index: 9, kind: input, shape index: {}]   ;;  %s1669_s10 = inlined_call_operand.vmem [shape: bf16[2,8,128], index: 10, kind: output, shape index: {}]  }
   0x1   :  { %16 = vsyncpa [#allocation5], 0  ;;  %s1533_s13 = smov 0  }
   0x2 LB: > { %s301_s16 = sshll.u32 %s1663_s4, 4  ;;  %s1542_s17 = sadd.s32 4294967295, %s1465_s13   ;;  %s1465_s13 = sphi %s1533_s13, %s22_s13   ;;  %s302_s16 = int_to_ptr.hbm [resolvable:$true] %s301_s16 }
   0x3   : > { %p1110_p0 = scmp.ge.s32.totalorder %s1465_s13, 1  ;;  %p273_p1 = scmp.lt.s32.totalorder %s1465_s13, 3 }
   0x4   : > { %p1314_p2 = scmp.eq.s32.totalorder %s1542_s17, 0  ;;  %s1467_s19 = smov [#allocation4]  }
   0x5   : > { %p1547_p3 = pnand %p1110_p0, %p273_p1  ;;  %s303_s20 = sshll.u32 %s1467_s19, 4  ;;  %s304_s20 = int_to_ptr.vmem [resolvable:$true] %s303_s20 }
   0x6   : > { %s284_s23 = sshll.u32 %s1661_s2, 4  ;;  %s1468_s25 = smov [#allocation2]   ;;  %s285_s23 = int_to_ptr.hbm [resolvable:$true] %s284_s23 }
   0x7   : > { %p1304_p4 = pneg %p1547_p3  ;;  %s286_s26 = sshll.u32 %s1468_s25, 4  ;;  %s287_s26 = int_to_ptr.vmem [resolvable:$true] %s286_s26 }
   0x8   : > { %s1469_s27 = smov 128   ;;  %s1470_s28 = smov 8  }
   0x9   : > { %p1558_p5 = pnand %p1314_p2, %p1304_p4  ;;  %s318_s11 = sshll.u32 %s1665_s6, 4  ;;  %s319_s11 = int_to_ptr.hbm [resolvable:$true] %s318_s11 }
   0xa   : > { %s1471_s12 = smov 64   ;;  %s1472_s14 = smov 4  }
   0xb   : > { %1310 = dma.hbm_to_vmem [thread:$0]  (!%p1558_p5), %s302_s16, 2048, %s304_s20, [#allocation5], %s1469_s27, %s1469_s27, %s1470_s28  }
   0xc   : > { %1307 = dma.hbm_to_vmem [thread:$0]  (!%p1558_p5), %s285_s23, 1024, %s287_s26, [#allocation3], %s1471_s12, %s1471_s12, %s1472_s14  }
   0xd   : > { %s1473_s15 = smov [#allocation6]   ;;  %359 = sbr.rel (%p1547_p3) target bundleno = 1666 (0x682), region = 60 }
   0xe   : > { %s320_s19 = sshll.u32 %s1473_s15, 4  ;;  %s321_s19 = int_to_ptr.vmem [resolvable:$true] %s320_s19 }
   0xf   : > { %1313 = dma.hbm_to_vmem [thread:$0]  (!%p1558_p5), %s319_s11, 1024, %s321_s19, [#allocation5], %s1471_s12, %s1471_s12, %s1472_s14  }
  0x12   : > { %1456 = dma.done.wait (%p1314_p2), [#allocation3], 1024  }
  0x13   : > { %1458 = vsyncadd (%p1314_p2), [#allocation3], 4294966272 }
  0x14   : > { %1460 = dma.done.wait (%p1314_p2), [#allocation5], 3072  }
  0x15   : > { %1462 = vsyncadd (%p1314_p2), [#allocation5], 4294964224  ;;  %v1267_v0 = vld [vmem:[#allocation2 + $0x38] sm:$0xff]  ;;  %v1212_v1 = vld [vmem:[#allocation4 + $0x70] sm:$0xf]  ;;  %p410_p6 = scmp.lt.s32.totalorder %s1542_s17, 1 }
  0x16   : > { %v1283_v2 = vld [vmem:[#allocation4 + $0x74] sm:$0xf0]  ;;  %v1204_v4 = vld [vmem:[#allocation4 + $0x60] sm:$0xf]  ;;  %v1281_v5 = vld [vmem:[#allocation4 + $0x64] sm:$0xf0]  ;;  %492 = vmatpush.bf16.msra.mxu0 %v1267_v0 }
  0x17   : > { %v1213_v3 = vor.u32 %v1283_v2, %v1212_v1  ;;  %v1266_v6 = vld [vmem:[#allocation2 + $0x30] sm:$0xff]  ;;  %v1205_v7 = vor.u32 %v1281_v5, %v1204_v4  ;;  %v1279_v9 = vld [vmem:[#allocation4 + $0x54] sm:$0xf0]  ;;  %v1265_v10 = vld [vmem:[#allocation2 + $0x28] sm:$0xff]  ;;  %s1673_s17 = smov (!%p410_p6, %s1542_s17), 1  ;;  %vm658_vm0 = vcmask 261120  }
  0x18   : > { %v1196_v8 = vld [vmem:[#allocation4 + $0x50] sm:$0xf]  ;;  %v1188_v12 = vld [vmem:[#allocation4 + $0x40] sm:$0xf]  ;;  %v1277_v13 = vld [vmem:[#allocation4 + $0x44] sm:$0xf0] }
  0x19   : > { %610 = vmatpush.bf16.msra.mxu1 %v1213_v3  ;;  %v1197_v11 = vor.u32 %v1279_v9, %v1196_v8  ;;  %v1282_v14 = vld [vmem:[#allocation4 + $0x74] sm:$0xf]  ;;  %v1214_v15 = vld [vmem:[#allocation4 + $0x78] sm:$0xf0]  ;;  %v1280_v16 = vld [vmem:[#allocation4 + $0x64] sm:$0xf]  ;;  %v1189_v20 = vor.u32 %v1277_v13, %v1188_v12 }
  0x1a   : > { %493 = vmatpush.bf16.msra.mxu0 %v1266_v6  ;;  %v1206_v17 = vld [vmem:[#allocation4 + $0x68] sm:$0xf0]  ;;  %v1264_v18 = vld [vmem:[#allocation2 + $0x20] sm:$0xff]  ;;  %v1217_v19 = vor.u32 %v1282_v14, %v1214_v15  ;;  %v1180_v21 = vld [vmem:[#allocation4 + $0x30] sm:$0xf]  ;;  %s1583_s16 = sshll.u32 %s1673_s17, 2 }
  0x1b   : > { %v1275_v22 = vld [vmem:[#allocation4 + $0x34] sm:$0xf0]  ;;  %v1209_v23 = vor.u32 %v1280_v16, %v1206_v17  ;;  %v1278_v24 = vld [vmem:[#allocation4 + $0x54] sm:$0xf]  ;;  %v1198_v25 = vld [vmem:[#allocation4 + $0x58] sm:$0xf0]  ;;  %s413_s21 = scalar_lea.vmem %s1659_s0, %s1583_s16  ;;  %s417_s24 = scalar_lea.vmem %s1660_s1, %s1583_s16 }
  0x1c   : > { %623 = vmatpush.bf16.msra.mxu2 %v1217_v19  ;;  %v1263_v26 = vld [vmem:[#allocation2 + $0x18] sm:$0xff]  ;;  %v1181_v27 = vor.u32 %v1275_v22, %v1180_v21  ;;  %v1172_v28 = vld [vmem:[#allocation4 + $0x20] sm:$0xf]  ;;  %v1273_v29 = vld [vmem:[#allocation4 + $0x24] sm:$0xf0]  ;;  %v1201_v30 = vor.u32 %v1278_v24, %v1198_v25  ;;  %s1474_s28 = smov 64   ;;  %s421_s22 = scalar_lea.vmem %s1669_s10, %s1583_s16 }
  0x1d   : > { %611 = vmatpush.bf16.msra.mxu1 %v1205_v7  ;;  %v1276_v31 = vld [vmem:[#allocation4 + $0x44] sm:$0xf]  ;;  %v1190_v32 = vld [vmem:[#allocation4 + $0x48] sm:$0xf0]  ;;  %v1262_v33 = vld [vmem:[#allocation2 + $0x10] sm:$0xff]  ;;  %v1173_v34 = vor.u32 %v1273_v29, %v1172_v28  ;;  %s1475_s29 = smov 96  }
  0x1e   : > { %494 = vmatpush.bf16.msra.mxu0 %v1265_v10  ;;  %v1164_v35 = vld [vmem:[#allocation4 + $0x10] sm:$0xf]  ;;  %v1271_v36 = vld [vmem:[#allocation4 + $0x14] sm:$0xf0]  ;;  %v1193_v37 = vor.u32 %v1276_v31, %v1190_v32  ;;  %v1274_v38 = vld [vmem:[#allocation4 + $0x34] sm:$0xf] }
  0x1f   : > { %v1182_v39 = vld [vmem:[#allocation4 + $0x38] sm:$0xf0]  ;;  %v1261_v40 = vld [vmem:[#allocation2 + $0x8] sm:$0xff]  ;;  %v1165_v41 = vor.u32 %v1271_v36, %v1164_v35  ;;  %v1156_v42 = vld [vmem:[#allocation4] sm:$0xf]  ;;  %s1476_s30 = smov 32  }
  0x20   : > { %624 = vmatpush.bf16.msra.mxu2 %v1209_v23  ;;  %v1269_v43 = vld [vmem:[#allocation4 + $0x4] sm:$0xf0]  ;;  %v1185_v44 = vor.u32 %v1274_v38, %v1182_v39  ;;  %v1272_v45 = vld [vmem:[#allocation4 + $0x24] sm:$0xf]  ;;  %v1174_v46 = vld [vmem:[#allocation4 + $0x28] sm:$0xf0] }
  0x21   : > { %612 = vmatpush.bf16.msra.mxu1 %v1197_v11  ;;  %v1260_v47 = vld [vmem:[#allocation2] sm:$0xff]  ;;  %v1157_v48 = vor.u32 %v1269_v43, %v1156_v42  ;;  %v1177_v49 = vor.u32 %v1272_v45, %v1174_v46  ;;  %v1270_v50 = vld [vmem:[#allocation4 + $0x14] sm:$0xf]  ;;  %v1166_v51 = vld [vmem:[#allocation4 + $0x18] sm:$0xf0]  ;;  %vm695_vm1 = vcmask 1043456  }
  0x22   : > { %495 = vmatpush.bf16.msra.mxu0 %v1264_v18  ;;  %v1593_v52 = vld [vmem:[%s413_s21] sm:$0xf]  ;;  %v1169_v54 = vor.u32 %v1270_v50, %v1166_v51  ;;  %v1268_v55 = vld [vmem:[#allocation4 + $0x4] sm:$0xf]  ;;  %v1158_v56 = vld [vmem:[#allocation4 + $0x8] sm:$0xf0] }
  0x23   : > { %v424_v53 = vld [vmem:[%s417_s24] sm:$0xf]  ;;  %v1161_v57 = vor.u32 %v1268_v55, %v1158_v56  ;;  %vm679_vm2 = vcmask 64512   ;;  %vm905_vm3 = vcmask 523264   ;;  %vm907_vm4 = vcmask 785408  }
  0x24   : > { %625 = vmatpush.bf16.msra.mxu2 %v1201_v30  ;;  %v521_v58 = vld [vmem:[%s1664_s5] sm:$0x3] }
  0x25   : > { %613 = vmatpush.bf16.msra.mxu1 %v1189_v20  ;;  %v522_v59 = vunpack.c.l.bf16 %v521_v58  ;;  %v441_v60 = vld [vmem:[%s1662_s3] sm:$0x1] }
  0x26   : > { %496 = vmatpush.bf16.msra.mxu0 %v1263_v26  ;;  %v442_v61 = vunpack.c.l.bf16 %v441_v60 }
  0x27   : > { %v524_v62 = vperm.slane %v522_v59, 0  ;;  %v525_v14 = vperm.slane %v522_v59, 2 }
  0x28   : > { %626 = vmatpush.bf16.msra.mxu2 %v1193_v37  ;;  %v443_v63 = vperm.slane %v442_v61, 0 }
  0x29   : > { %614 = vmatpush.bf16.msra.mxu1 %v1181_v27  ;;  %v528_v0 = vperm.slane %v524_v62, 0  ;;  %v529_v16 = vperm.slane %v525_v14, 0 }
  0x2a   : > { %497 = vmatpush.bf16.msra.mxu0 %v1262_v33 }
  0x2c   : > { %627 = vmatpush.bf16.msra.mxu2 %v1185_v44 }
  0x2d   : > { %615 = vmatpush.bf16.msra.mxu1 %v1173_v34 }
  0x2e   : > { %498 = vmatpush.bf16.msra.mxu0 %v1261_v40 }
  0x30   : > { %628 = vmatpush.bf16.msra.mxu2 %v1177_v49 }
  0x31   : > { %616 = vmatpush.bf16.msra.mxu1 %v1165_v41 }
  0x32   : > { %499 = vmatpush.bf16.msra.mxu0 %v1260_v47 }
  0x34   : > { %629 = vmatpush.bf16.msra.mxu2 %v1169_v54 }
  0x35   : > { %617 = vmatpush.bf16.msra.mxu1 %v1157_v48  ;;  %500 = vmatmul.bf16.vlgmr.msra.gmra.mxu0 %v1593_v52 }
  0x38   : > { %618 = vmatmul.bf16.vlgmr.msra.gmra.mxu1 %v424_v53  ;;  %630 = vmatpush.bf16.msra.mxu2 %v1161_v57 }
  0x3b   : > { %631 = vmatmul.bf16.vlgmr.msra.gmra.mxu2 %v424_v53 }
  0xb2   : > { %v501_v1 = vpop.f32.mrf.mxu0 }
  0xb3   : > { %v502_v3 = vadd.f32 %v501_v1, %v443_v63 }
  0xb5   : > { %v619_v2 = vpop.f32.mrf.mxu1  ;;  %v655_v6 = vpack.c.bf16 %v502_v3, %v502_v3 }
  0xb6   : > { %v620_v4 = vadd.f32 %v619_v2, %v528_v0 }
  0xb7   : > { %v713_v12 = vunpack.c.l.b16 %v655_v6 }
  0xb8   : > { %v656_v5 = vpack.c.bf16 %v620_v4, %v620_v4 }
  0xb9   : > { %v714_v13 = vpack.c.b16 %v713_v12, %v713_v12 }
  0xba   : > { %v718_v7 = vunpack.c.l.b16 %v656_v5  ;;  %v663_v8 = vsel %vm658_vm0, %v656_v5, 0  ;;  %v503_v10 = vpop.f32.mrf.mxu0 }
  0xbb   : > { %672 = vmatpush.bf16.xpose.msra.mxu3 %v663_v8 }
  0xbc   : > { %v719_v9 = vpack.c.b16 %v718_v7, %v718_v7 }
  0xbd   : > { %v621_v11 = vpop.f32.mrf.mxu1 }
  0xbe   : > { %780 = vrot.lane.b32.xlu2 %v719_v9, %s1474_s28  ;;  %720 = vrot.lane.b32.xlu1 %v719_v9, %s1475_s29  ;;  %v632_v15 = vpop.f32.mrf.mxu2 }
  0xbf   : > { %v633_v17 = vadd.f32 %v632_v15, %v529_v16 }
  0xc1   : > { %v657_v19 = vpack.c.bf16 %v633_v17, %v633_v17 }
  0xc2   : > { %1218 = vmatmul.msk.bf16.vlgmr.msra.gmra.mxu3 %vm658_vm0, %v655_v6 }
  0xc3   : > { %v697_v20 = vsel %vm695_vm1, %v657_v19, 0  ;;  %v755_v58 = vunpack.c.l.b16 %v657_v19 }
  0xc4   : > { %706 = vmatpush.bf16.msrb.mxu3 %v697_v20 }
  0xc5   : > { %v756_v59 = vpack.c.b16 %v755_v58, %v755_v58 }
  0xc6   : > { %837 = vrot.lane.b32.xlu2 %v719_v9, %s1476_s30  ;;  %715 = vrot.lane.b32.xlu1 %v714_v13, %s1475_s29  ;;  %v634_v18 = vpop.f32.mrf.mxu2 }
  0xce   : > { %835 = vrot.lane.b32.xlu1 %v714_v13, %s1476_s30 }
 0x118   : > { %v781_v21 = vpop.permute.xlu2 %780 }
 0x119   : > { %v786_v22 = vsel %vm658_vm0, %v781_v21, 0 }
 0x11a   : > { %795 = vmatpush.bf16.xpose.msrb.mxu2 %v786_v22 }
 0x120   : > { %v838_v37 = vpop.permute.xlu2 %837 }
 0x121   : > { %v843_v39 = vsel %vm658_vm0, %v838_v37, 0  ;;  %v1289_v37 = vld [vmem:[#allocation6 + $0x28] sm:$0xff] }
 0x130   : > { %v721_v23 = vpop.permute.xlu1 %720 }
 0x131   : > { %v726_v24 = vsel %vm658_vm0, %v721_v23, 0 }
 0x132   : > { %735 = vmatpush.bf16.xpose.msra.mxu3 %v726_v24 }
 0x138   : > { %v716_v41 = vpop.permute.xlu1 %715 }
 0x140   : > { %v836_v42 = vpop.permute.xlu1 %835 }
 0x145   : > { %v674_v25 = vpop.f32.mrf.mxu3 }
 0x146   : > { %v678_v26 = vmul.f32 0.17677669, %v674_v25 }
 0x148   : > { %v680_v27 = vsel %vm679_vm2, %v678_v26, -inf }
 0x149   : > { %681 = vmax.xlane.f32.xlu0 %v680_v27 }
 0x14d   : > { %v676_v28 = vpop.f32.mrf.mxu3 }
 0x1bc   : > { %v682_v29 = vpop.xlane.xlu0 %681 }
 0x1bd   : > { %v683_v30 = vsub.f32 %v678_v26, %v682_v29 }
 0x1bf   : > { %v684_v31 = vmul.f32 1.442695, %v683_v30 }
 0x1c1   : > { %1341 = vpow2.f32 %v684_v31 }
 0x1c7   : > { %v1342_v32 = vpop.eup %1341 }
 0x1c8   : > { %v686_v33 = vsel %vm679_vm2, %v1342_v32, 0.0 }
 0x1c9   : > { %687 = vadd.xlane.f32.xlu0 %v686_v33 }
 0x1dd   : > { %778 = vrot.lane.b32.xlu0 %v714_v13, %s1474_s28 }
 0x23c   : > { %v688_v34 = vpop.xlane.xlu0 %687 }
 0x23d   : > { %1343 = vrcp.f32 %v688_v34 }
 0x243   : > { %v1344_v35 = vpop.eup %1343 }
 0x244   : > { %v690_v36 = vmul.f32 %v1344_v35, %v1342_v32  ;;  %v1291_v35 = vld [vmem:[#allocation6 + $0x38] sm:$0xff] }
 0x245   : > { %960 = vmatpush.bf16.msrb.mxu1 %v1291_v35 }
 0x246   : > { %v691_v38 = vpack.c.bf16 %v690_v36, %v690_v36  ;;  %v1290_v36 = vld [vmem:[#allocation6 + $0x30] sm:$0xff] }
 0x248   : > { %1219 = vmatmul.msk.bf16.vlgmr.msrb.gmra.mxu3 %vm679_vm2, %v691_v38  ;;  %v1288_v38 = vld [vmem:[#allocation6 + $0x20] sm:$0xff] }
 0x249   : > { %852 = vmatpush.bf16.xpose.msrb.mxu3 %v843_v39  ;;  %961 = vmatpush.bf16.msrb.mxu1 %v1290_v36  ;;  %v1287_v39 = vld [vmem:[#allocation6 + $0x18] sm:$0xff] }
 0x24d   : > { %962 = vmatpush.bf16.msrb.mxu1 %v1289_v37 }
 0x24f   : > { %v779_v40 = vpop.permute.xlu0 %778 }
 0x250   : > { %1222 = vmatmul.msk.bf16.vlgmr.msrb.gmra.mxu2 %vm658_vm0, %v779_v40  ;;  %v1286_v40 = vld [vmem:[#allocation6 + $0x10] sm:$0xff] }
 0x251   : > { %963 = vmatpush.bf16.msrb.mxu1 %v1288_v38 }
 0x255   : > { %964 = vmatpush.bf16.msrb.mxu1 %v1287_v39 }
 0x258   : > { %1220 = vmatmul.msk.bf16.vlgmr.msra.gmra.mxu3 %vm658_vm0, %v716_v41  ;;  %v1285_v41 = vld [vmem:[#allocation6 + $0x8] sm:$0xff] }
 0x259   : > { %965 = vmatpush.bf16.msrb.mxu1 %v1286_v40 }
 0x25d   : > { %966 = vmatpush.bf16.msrb.mxu1 %v1285_v41 }
 0x268   : > { %1224 = vmatmul.msk.bf16.vlgmr.msrb.gmra.mxu3 %vm658_vm0, %v836_v42  ;;  %v1284_v42 = vld [vmem:[#allocation6] sm:$0xff] }
 0x269   : > { %967 = vmatpush.bf16.msrb.mxu1 %v1284_v42 }
 0x2cb   : > { %v1620_v43 = vpop.f32.mrf.mxu3 }
 0x2d3   : > { %v710_v44 = vpop.f32.mrf.mxu3  ;;  %v797_v45 = vpop.f32.mrf.mxu2 }
 0x2d4   : > { %v801_v46 = vmul.f32 0.17677669, %v797_v45 }
 0x2d6   : > { %v802_v47 = vsel %vm679_vm2, %v801_v46, -inf }
 0x2d7   : > { %803 = vmax.xlane.f32.xlu1 %v802_v47 }
 0x2db   : > { %v737_v48 = vpop.f32.mrf.mxu3  ;;  %v799_v49 = vpop.f32.mrf.mxu2 }
 0x2dc   : > { %v741_v50 = vmul.f32 0.17677669, %v737_v48 }
 0x2de   : > { %v742_v51 = vsel %vm679_vm2, %v741_v50, -inf }
 0x2df   : > { %743 = vmax.xlane.f32.xlu2 %v742_v51  ;;  %v652_v51 = vld [vmem:[%s1666_s7] sm:$0x1] }
 0x2e3   : > { %v739_v53 = vpop.f32.mrf.mxu3 }
 0x2e4   : > { %v910_v53 = vunpack.c.l.bf16 %v652_v51 }
 0x2eb   : > { %v854_v54 = vpop.f32.mrf.mxu3 }
 0x2ec   : > { %v858_v55 = vmul.f32 0.17677669, %v854_v54  ;;  %v911_v54 = vperm.slane %v910_v53, 0 }
 0x2ee   : > { %v859_v56 = vsel %vm679_vm2, %v858_v55, -inf }
 0x2ef   : > { %860 = vmax.xlane.f32.xlu0 %v859_v56 }
 0x2f3   : > { %v856_v57 = vpop.f32.mrf.mxu3 }
 0x303   : > { %814 = vrot.lane.b32.xlu0 %v756_v59, %s1474_s28 }
 0x34a   : > { %v804_v60 = vpop.xlane.xlu1 %803 }
 0x34b   : > { %v805_v61 = vsub.f32 %v801_v46, %v804_v60  ;;  %v1477_v60 = vmov 128.0  }
 0x34d   : > { %v806_v62 = vmul.f32 1.442695, %v805_v61 }
 0x34f   : > { %1345 = vpow2.f32 %v806_v62 }
 0x352   : > { %v744_v63 = vpop.xlane.xlu2 %743 }
 0x353   : > { %v745_v0 = vsub.f32 %v741_v50, %v744_v63 }
 0x355   : > { %v1346_v1 = vpop.eup %1345  ;;  %v746_v2 = vmul.f32 1.442695, %v745_v0 }
 0x356   : > { %v808_v3 = vsel %vm679_vm2, %v1346_v1, 0.0 }
 0x357   : > { %1347 = vpow2.f32 %v746_v2  ;;  %809 = vadd.xlane.f32.xlu1 %v808_v3 }
 0x35d   : > { %v1348_v4 = vpop.eup %1347 }
 0x35e   : > { %v748_v5 = vsel %vm679_vm2, %v1348_v4, 0.0 }
 0x35f   : > { %749 = vadd.xlane.f32.xlu2 %v748_v5 }
 0x362   : > { %v861_v6 = vpop.xlane.xlu0 %860 }
 0x363   : > { %v862_v7 = vsub.f32 %v858_v55, %v861_v6  ;;  %v973_v55 = vunpack.c.l.bf16 %v1593_v52 }
 0x365   : > { %v863_v8 = vmul.f32 1.442695, %v862_v7 }
 0x367   : > { %1349 = vpow2.f32 %v863_v8 }
 0x36d   : > { %v1350_v9 = vpop.eup %1349 }
 0x36e   : > { %v865_v10 = vsel %vm679_vm2, %v1350_v9, 0.0 }
 0x36f   : > { %866 = vadd.xlane.f32.xlu1 %v865_v10 }
 0x375   : > { %v815_v11 = vpop.permute.xlu0 %814 }
 0x376   : > { %v820_v12 = vsel %vm695_vm1, %v815_v11, 0 }
 0x377   : > { %757 = vrot.lane.b32.xlu2 %v756_v59, %s1475_s29  ;;  %829 = vmatpush.bf16.msra.mxu2 %v820_v12 }
 0x388   : > { %871 = vrot.lane.b32.xlu1 %v756_v59, %s1476_s30 }
 0x3ca   : > { %v810_v13 = vpop.xlane.xlu1 %809 }
 0x3cb   : > { %1351 = vrcp.f32 %v810_v13 }
 0x3d1   : > { %v1352_v14 = vpop.eup %1351 }
 0x3d2   : > { %v812_v15 = vmul.f32 %v1352_v14, %v1346_v1  ;;  %v750_v16 = vpop.xlane.xlu2 %749  ;;  %v1339_v14 = vld [vmem:[%s1667_s8] ss:$0 sm:$0xff] }
 0x3d3   : > { %1353 = vrcp.f32 %v750_v16  ;;  %v1340_v16 = vld [vmem:[%s1668_s9] ss:$0 sm:$0xff] }
 0x3d4   : > { %v813_v17 = vpack.c.bf16 %v812_v15, %v812_v15 }
 0x3d6   : > { %1223 = vmatmul.msk.bf16.vlgmr.msra.gmra.mxu2 %vm679_vm2, %v813_v17 }
 0x3d9   : > { %v1354_v18 = vpop.eup %1353 }
 0x3da   : > { %v752_v19 = vmul.f32 %v1354_v18, %v1348_v4  ;;  %v758_v20 = vpop.permute.xlu2 %757 }
 0x3db   : > { %v763_v21 = vsel %vm695_vm1, %v758_v20, 0 }
 0x3dc   : > { %772 = vmatpush.bf16.msrb.mxu0 %v763_v21  ;;  %v753_v22 = vpack.c.bf16 %v752_v19, %v752_v19 }
 0x3df   : > { %1221 = vmatmul.msk.bf16.vlgmr.msrb.gmra.mxu0 %vm679_vm2, %v753_v22 }
 0x3e2   : > { %v867_v23 = vpop.xlane.xlu1 %866 }
 0x3e3   : > { %1355 = vrcp.f32 %v867_v23 }
 0x3e4   : > { %1357 = vrcp.f32 %v1477_v60 }
 0x3e9   : > { %v1356_v24 = vpop.eup %1355 }
 0x3ea   : > { %v869_v25 = vmul.f32 %v1356_v24, %v1350_v9 }
 0x3ec   : > { %v870_v28 = vpack.c.bf16 %v869_v25, %v869_v25 }
 0x3fa   : > { %v872_v26 = vpop.permute.xlu1 %871 }
 0x3fb   : > { %v877_v27 = vsel %vm695_vm1, %v872_v26, 0 }
 0x3fc   : > { %886 = vmatpush.bf16.msra.mxu0 %v877_v27 }
 0x3ff   : > { %1225 = vmatmul.msk.bf16.vlgmr.msra.gmra.mxu0 %vm679_vm2, %v870_v28 }
 0x459   : > { %v831_v29 = vpop.f32.mrf.mxu2 }
 0x45c   : > { %v774_v30 = vpop.f32.mrf.mxu0 }
 0x45d   : > { %893 = vrot.lane.b32.xlu2 %v774_v30, %s1476_s30 }
 0x461   : > { %v833_v31 = vpop.f32.mrf.mxu2 }
 0x464   : > { %v776_v32 = vpop.f32.mrf.mxu0 }
 0x465   : > { %897 = vrot.lane.b32.xlu2 %v831_v29, %s1474_s28 }
 0x47c   : > { %v888_v33 = vpop.f32.mrf.mxu0 }
 0x47d   : > { %901 = vrot.lane.b32.xlu0 %v888_v33, %s1475_s29 }
 0x484   : > { %v890_v34 = vpop.f32.mrf.mxu0 }
 0x4b7   : > { %v894_v44 = vpop.permute.xlu2 %893 }
 0x4b8   : > { %v904_v46 = vsel %vm658_vm0, %v1620_v43, %v894_v44  ;;  %v1358_v43 = vpop.eup %1357 }
 0x4b9   : > { %v978_v61 = vmul.f32 128.0, %v1358_v43  ;;  %vm982_vm5 = vweird.f32 %v1358_v43 }
 0x4bb   : > { %v979_v62 = vsub.f32 1.0, %v978_v61 }
 0x4bd   : > { %v980_v63 = vmul.f32 %v1358_v43, %v979_v62 }
 0x4bf   : > { %v898_v45 = vpop.permute.xlu2 %897  ;;  %v981_v0 = vadd.f32 %v1358_v43, %v980_v63 }
 0x4c0   : > { %v906_v47 = vsel %vm905_vm3, %v904_v46, %v898_v45 }
 0x4c1   : > { %v983_v1 = vsel %vm982_vm5, %v1358_v43, %v981_v0 }
 0x4ef   : > { %v902_v48 = vpop.permute.xlu0 %901 }
 0x4f0   : > { %v908_v49 = vsel %vm907_vm4, %v906_v47, %v902_v48 }
 0x4f1   : > { %v909_v50 = vpack.c.bf16 %v908_v49, %v908_v49 }
 0x4f3   : > { %968 = vmatmul.bf16.vlgmr.msrb.gmra.mxu1 %v909_v50 }
 0x570   : > { %v969_v56 = vpop.f32.mrf.mxu1 }
 0x571   : > { %v970_v57 = vadd.f32 %v969_v56, %v911_v54 }
 0x573   : > { %v974_v58 = vadd.f32 %v973_v55, %v970_v57 }
 0x575   : > { %975 = vadd.xlane.f32.xlu2 %v974_v58 }
 0x578   : > { %v971_v59 = vpop.f32.mrf.mxu1 }
 0x5e8   : > { %v976_v2 = vpop.xlane.xlu2 %975 }
 0x5e9   : > { %v984_v3 = vmul.f32 %v983_v1, %v976_v2 }
 0x5eb   : > { %v985_v4 = vsub.f32 %v974_v58, %v984_v3 }
 0x5ed   : > { %v986_v5 = vmul.f32 %v985_v4, %v985_v4 }
 0x5ef   : > { %987 = vadd.xlane.f32.xlu0 %v986_v5 }
 0x662   : > { %v988_v52 = vpop.xlane.xlu0 %987 }
 0x663   : > { %v989_v6 = vmul.f32 %v988_v52, %v983_v1 }
 0x665   : > { %v990_v7 = vadd.f32 1e-05, %v989_v6 }
 0x667   : > { %1359 = vrsqrt.f32 %v990_v7  ;;  %vm997_vm7 = vweird.f32 %v990_v7 }
 0x66d   : > { %v1360_v8 = vpop.eup %1359 }
 0x66e   : > { %v992_v9 = vmul.f32 %v1360_v8, %v990_v7  ;;  %vm998_vm6 = vweird.f32 %v1360_v8 }
 0x66f   : > { %vm999_vm8 = vmor %vm997_vm7, %vm998_vm6 }
 0x670   : > { %v993_v10 = vmul.f32 %v1360_v8, %v992_v9 }
 0x672   : > { %v994_v11 = vmul.f32 0.5, %v993_v10 }
 0x674   : > { %v995_v12 = vsub.f32 1.5, %v994_v11 }
 0x676   : > { %v996_v13 = vmul.f32 %v1360_v8, %v995_v12 }
 0x678   : > { %v1000_v15 = vsel %vm999_vm8, %v1360_v8, %v996_v13 }
 0x679   : > { %v1001_v17 = vmul.f32 %v1000_v15, %v985_v4 }
 0x67b   : > { %v1005_v18 = vmul.f32 %v1339_v14, %v1001_v17 }
 0x67d   : > { %v1009_v19 = vadd.f32 %v1340_v16, %v1005_v18 }
 0x67f   : > { %v1010_v20 = vpack.c.bf16 %v1009_v19, %v1009_v19 }
 0x681   : > { %1011 = vst [vmem:[%s421_s22] sm:$0xf] %v1010_v20 }
 0x682 PF: > { %s22_s13 = sadd.s32 1, %s1465_s13  }
 0x683   : > { %p19_p7 = scmp.ge.s32.totalorder %s22_s13, 4  }
 0x685   :  { %21 = sbr.rel (!%p19_p7) target bundleno = 2 (0x2), region = 106 }
 0x68a   :  { %1031 = vsyncpa [#allocation3], 1 }
 0x68b   :  { %1033 = vsyncpa [#allocation3 + $0x1], 1 }
 0x68c   :  { %1034 = vsyncpa [#allocation5], 1 }

// kernel: decoder_forward.7
= control target key start
LH: loop header
LB: loop body
LE: loop exit
PB: predicated region body
PF: predicated region fallthrough
CT: control target
= control target key end

     0   :  { %12 = vsyncpa [#allocation3], 0  ;;  %s1468_s0 = inlined_call_operand.vmem [shape: bf16[2,8,128], index: 0, kind: input, shape index: {}]   ;;  %s1469_s1 = inlined_call_operand.hbm [shape: bf16[128,384], index: 1, kind: input, shape index: {}]   ;;  %s1470_s2 = inlined_call_operand.vmem [shape: bf16[1,384], index: 2, kind: input, shape index: {}]   ;;  %s1471_s3 = inlined_call_operand.hbm [shape: bf16[128,128], index: 3, kind: input, shape index: {}]   ;;  %s1472_s4 = inlined_call_operand.vmem [shape: bf16[1,128], index: 4, kind: input, shape index: {}]   ;;  %s1473_s5 = inlined_call_operand.vmem [shape: f32[1,128], index: 5, kind: input, shape index: {}]   ;;  %s1474_s6 = inlined_call_operand.vmem [shape: f32[1,128], index: 6, kind: input, shape index: {}]   ;;  %s1475_s7 = inlined_call_operand.vmem [shape: bf16[2,8,128], index: 7, kind: output, shape index: {}]  }
   0x1   :  { %13 = vsyncpa [#allocation5], 0  ;;  %s1347_s24 = smov 0  }
   0x2 LB: > { %s213_s27 = sshll.u32 %s1469_s1, 4  ;;  %s1356_s28 = sadd.s32 4294967295, %s1295_s24   ;;  %s1295_s24 = sphi %s1347_s24, %s19_s24   ;;  %s214_s27 = int_to_ptr.hbm [resolvable:$true] %s213_s27 }
   0x3   : > { %p983_p0 = scmp.ge.s32.totalorder %s1295_s24, 1  ;;  %p202_p1 = scmp.lt.s32.totalorder %s1295_s24, 3 }
   0x4   : > { %p1177_p2 = scmp.eq.s32.totalorder %s1356_s28, 0  ;;  %s1297_s30 = smov [#allocation2]  }
   0x5   : > { %p1361_p3 = pnand %p983_p0, %p202_p1  ;;  %s215_s8 = sshll.u32 %s1297_s30, 4  ;;  %s216_s8 = int_to_ptr.vmem [resolvable:$true] %s215_s8 }
   0x6   : > { %s230_s11 = sshll.u32 %s1471_s3, 4  ;;  %s1298_s12 = smov [#allocation4]   ;;  %s231_s11 = int_to_ptr.hbm [resolvable:$true] %s230_s11 }
   0x7   : > { %p1170_p4 = pneg %p1361_p3  ;;  %s232_s13 = sshll.u32 %s1298_s12, 4  ;;  %s233_s13 = int_to_ptr.vmem [resolvable:$true] %s232_s13 }
   0x8   : > { %s1299_s14 = smov 192   ;;  %s1300_s15 = smov 12  }
   0x9   : > { %p1171_p5 = pnand %p1177_p2, %p1170_p4  ;;  %s1301_s16 = smov 64  }
   0xa   : > { %s1302_s17 = smov 4   ;;  %264 = sbr.rel (%p1361_p3) target bundleno = 1665 (0x681), region = 48 }
   0xb   : > { %1173 = dma.hbm_to_vmem [thread:$0]  (!%p1171_p5), %s214_s27, 3072, %s216_s8, [#allocation3], %s1299_s14, %s1299_s14, %s1300_s15  }
   0xc   : > { %1176 = dma.hbm_to_vmem [thread:$0]  (!%p1171_p5), %s231_s11, 1024, %s233_s13, [#allocation5], %s1301_s16, %s1301_s16, %s1302_s17  }
   0xf   : > { %1286 = dma.done.wait (%p1177_p2), [#allocation3], 3072  }
  0x10   : > { %1288 = vsyncadd (%p1177_p2), [#allocation3], 4294964224 }
  0x11   : > { %1290 = dma.done.wait (%p1177_p2), [#allocation5], 1024  }
  0x12   : > { %1292 = vsyncadd (%p1177_p2), [#allocation5], 4294966272  ;;  %v1078_v0 = vld [vmem:[#allocation2 + $0xa8] sm:$0xf]  ;;  %v1152_v1 = vld [vmem:[#allocation2 + $0xb0] sm:$0xf0] }
  0x13   : > { %v1151_v2 = vld [vmem:[#allocation2 + $0xac] sm:$0xf]  ;;  %v1079_v3 = vor.u32 %v1152_v1, %v1078_v0  ;;  %v1080_v4 = vld [vmem:[#allocation2 + $0xb4] sm:$0xf0]  ;;  %v1066_v5 = vld [vmem:[#allocation2 + $0x90] sm:$0xf] }
  0x14   : > { %v1149_v6 = vld [vmem:[#allocation2 + $0x98] sm:$0xf0]  ;;  %v1083_v7 = vor.u32 %v1151_v2, %v1080_v4  ;;  %v1148_v8 = vld [vmem:[#allocation2 + $0x94] sm:$0xf]  ;;  %v1068_v9 = vld [vmem:[#allocation2 + $0x9c] sm:$0xf0] }
  0x15   : > { %482 = vmatpush.bf16.msra.mxu0 %v1079_v3  ;;  %v1067_v10 = vor.u32 %v1149_v6, %v1066_v5  ;;  %v1071_v11 = vor.u32 %v1148_v8, %v1068_v9  ;;  %v1054_v12 = vld [vmem:[#allocation2 + $0x78] sm:$0xf]  ;;  %v1146_v13 = vld [vmem:[#allocation2 + $0x80] sm:$0xf0]  ;;  %v1145_v14 = vld [vmem:[#allocation2 + $0x7c] sm:$0xf] }
  0x16   : > { %495 = vmatpush.bf16.msra.mxu1 %v1083_v7  ;;  %v1056_v15 = vld [vmem:[#allocation2 + $0x84] sm:$0xf0]  ;;  %v1055_v16 = vor.u32 %v1146_v13, %v1054_v12  ;;  %v1042_v18 = vld [vmem:[#allocation2 + $0x60] sm:$0xf]  ;;  %v1143_v19 = vld [vmem:[#allocation2 + $0x68] sm:$0xf0] }
  0x17   : > { %v1059_v17 = vor.u32 %v1145_v14, %v1056_v15  ;;  %v1142_v20 = vld [vmem:[#allocation2 + $0x64] sm:$0xf]  ;;  %v1044_v21 = vld [vmem:[#allocation2 + $0x6c] sm:$0xf0]  ;;  %v1043_v22 = vor.u32 %v1143_v19, %v1042_v18  ;;  %v1153_v24 = vld [vmem:[#allocation2 + $0xb8] sm:$0xf0] }
  0x18   : > { %v1086_v23 = vld [vmem:[#allocation2 + $0xb0] sm:$0xf]  ;;  %v1074_v25 = vld [vmem:[#allocation2 + $0x98] sm:$0xf]  ;;  %v1047_v26 = vor.u32 %v1142_v20, %v1044_v21  ;;  %v1030_v27 = vld [vmem:[#allocation2 + $0x48] sm:$0xf] }
  0x19   : > { %483 = vmatpush.bf16.msra.mxu0 %v1067_v10  ;;  %v1140_v28 = vld [vmem:[#allocation2 + $0x50] sm:$0xf0]  ;;  %v1087_v29 = vor.u32 %v1153_v24, %v1086_v23  ;;  %v1150_v30 = vld [vmem:[#allocation2 + $0xa0] sm:$0xf0]  ;;  %v1139_v31 = vld [vmem:[#allocation2 + $0x4c] sm:$0xf] }
  0x1a   : > { %496 = vmatpush.bf16.msra.mxu1 %v1071_v11  ;;  %v1032_v32 = vld [vmem:[#allocation2 + $0x54] sm:$0xf0]  ;;  %v1075_v33 = vor.u32 %v1150_v30, %v1074_v25  ;;  %v1031_v34 = vor.u32 %v1140_v28, %v1030_v27  ;;  %p300_p6 = scmp.lt.s32.totalorder %s1356_s28, 1  ;;  %v1062_v35 = vld [vmem:[#allocation2 + $0x80] sm:$0xf]  ;;  %vm543_vm0 = vcmask 261120  }
  0x1b   : > { %508 = vmatpush.bf16.msra.mxu2 %v1087_v29  ;;  %v1147_v36 = vld [vmem:[#allocation2 + $0x88] sm:$0xf0]  ;;  %v1035_v37 = vor.u32 %v1139_v31, %v1032_v32  ;;  %v1018_v38 = vld [vmem:[#allocation2 + $0x30] sm:$0xf]  ;;  %v1137_v39 = vld [vmem:[#allocation2 + $0x38] sm:$0xf0] }
  0x1c   : > { %v1136_v40 = vld [vmem:[#allocation2 + $0x34] sm:$0xf]  ;;  %v1020_v41 = vld [vmem:[#allocation2 + $0x3c] sm:$0xf0]  ;;  %v1063_v42 = vor.u32 %v1147_v36, %v1062_v35  ;;  %v1019_v43 = vor.u32 %v1137_v39, %v1018_v38  ;;  %v1050_v44 = vld [vmem:[#allocation2 + $0x68] sm:$0xf]  ;;  %v564_v39 = vlaneseq }
  0x1d   : > { %484 = vmatpush.bf16.msra.mxu0 %v1055_v16  ;;  %v1144_v45 = vld [vmem:[#allocation2 + $0x70] sm:$0xf0]  ;;  %v1023_v46 = vor.u32 %v1136_v40, %v1020_v41  ;;  %v1006_v47 = vld [vmem:[#allocation2 + $0x18] sm:$0xf]  ;;  %v1134_v48 = vld [vmem:[#allocation2 + $0x20] sm:$0xf0] }
  0x1e   : > { %497 = vmatpush.bf16.msra.mxu1 %v1059_v17  ;;  %v1133_v49 = vld [vmem:[#allocation2 + $0x1c] sm:$0xf]  ;;  %v1008_v50 = vld [vmem:[#allocation2 + $0x24] sm:$0xf0]  ;;  %s1478_s28 = smov (!%p300_p6, %s1356_s28), 1  ;;  %v1051_v51 = vor.u32 %v1144_v45, %v1050_v44  ;;  %v1007_v52 = vor.u32 %v1134_v48, %v1006_v47  ;;  %s1303_s25 = smov 64  }
  0x1f   : > { %509 = vmatpush.bf16.msra.mxu2 %v1075_v33  ;;  %v1038_v53 = vld [vmem:[#allocation2 + $0x50] sm:$0xf]  ;;  %v1141_v54 = vld [vmem:[#allocation2 + $0x58] sm:$0xf0]  ;;  %v1011_v55 = vor.u32 %v1133_v49, %v1008_v50  ;;  %v994_v56 = vld [vmem:[#allocation2] sm:$0xf] }
  0x20   : > { %v1131_v57 = vld [vmem:[#allocation2 + $0x8] sm:$0xf0]  ;;  %v1130_v58 = vld [vmem:[#allocation2 + $0x4] sm:$0xf]  ;;  %v996_v59 = vld [vmem:[#allocation2 + $0xc] sm:$0xf0]  ;;  %v1039_v60 = vor.u32 %v1141_v54, %v1038_v53 }
  0x21   : > { %485 = vmatpush.bf16.msra.mxu0 %v1043_v22  ;;  %s990_s18 = sshll.u32 %s1478_s28, 2  ;;  %v995_v61 = vor.u32 %v1131_v57, %v994_v56  ;;  %v1026_v62 = vld [vmem:[#allocation2 + $0x38] sm:$0xf]  ;;  %v1138_v63 = vld [vmem:[#allocation2 + $0x40] sm:$0xf0]  ;;  %v999_v0 = vor.u32 %v1130_v58, %v996_v59  ;;  %s1304_s26 = smov 96  }
  0x22   : > { %498 = vmatpush.bf16.msra.mxu1 %v1047_v26  ;;  %s303_s21 = scalar_lea.vmem %s1468_s0, %s990_s18  ;;  %v1027_v1 = vor.u32 %v1138_v63, %v1026_v62  ;;  %v1014_v3 = vld [vmem:[#allocation2 + $0x20] sm:$0xf]  ;;  %v1135_v4 = vld [vmem:[#allocation2 + $0x28] sm:$0xf0]  ;;  %v1002_v6 = vld [vmem:[#allocation2 + $0x8] sm:$0xf]  ;;  %s307_s14 = scalar_lea.vmem %s1475_s7, %s990_s18 }
  0x23   : > { %510 = vmatpush.bf16.msra.mxu2 %v1063_v42  ;;  %v1394_v2 = vld [vmem:[%s303_s21] sm:$0xf]  ;;  %v1015_v5 = vor.u32 %v1135_v4, %v1014_v3  ;;  %v1132_v7 = vld [vmem:[#allocation2 + $0x10] sm:$0xf0]  ;;  %s1305_s27 = smov 32   ;;  %vm586_vm1 = vcmask 1043456  }
  0x24   : > { %v1003_v8 = vor.u32 %v1132_v7, %v1002_v6  ;;  %v342_v9 = vld [vmem:[%s1470_s2] sm:$0x7]  ;;  %v565_v40 = vshrl.u32 %v564_v39, 7  ;;  %v567_v41 = vand.u32 127, %v564_v39  ;;  %vm570_vm3 = vcmask 64512  }
  0x25   : > { %486 = vmatpush.bf16.msra.mxu0 %v1031_v34  ;;  %v343_v10 = vunpack.c.l.bf16 %v342_v9  ;;  %vm799_vm4 = vcmask 523264   ;;  %vm801_vm5 = vcmask 785408  }
  0x26   : > { %499 = vmatpush.bf16.msra.mxu1 %v1035_v37  ;;  %vm568_vm2 = vcmp.le.s32.totalorder %v567_v41, %v565_v40 }
  0x27   : > { %511 = vmatpush.bf16.msra.mxu2 %v1051_v51  ;;  %v345_v11 = vperm.slane %v343_v10, 0  ;;  %v346_v12 = vperm.slane %v343_v10, 2  ;;  %v347_v28 = vperm.slane %v343_v10, 4 }
  0x29   : > { %487 = vmatpush.bf16.msra.mxu0 %v1019_v43  ;;  %v351_v13 = vperm.slane %v345_v11, 0  ;;  %v352_v14 = vperm.slane %v346_v12, 0  ;;  %v353_v30 = vperm.slane %v347_v28, 0 }
  0x2a   : > { %500 = vmatpush.bf16.msra.mxu1 %v1023_v46 }
  0x2b   : > { %512 = vmatpush.bf16.msra.mxu2 %v1039_v60 }
  0x2d   : > { %488 = vmatpush.bf16.msra.mxu0 %v1007_v52 }
  0x2e   : > { %501 = vmatpush.bf16.msra.mxu1 %v1011_v55 }
  0x2f   : > { %513 = vmatpush.bf16.msra.mxu2 %v1027_v1 }
  0x31   : > { %489 = vmatpush.bf16.msra.mxu0 %v995_v61 }
  0x32   : > { %502 = vmatpush.bf16.msra.mxu1 %v999_v0 }
  0x33   : > { %514 = vmatpush.bf16.msra.mxu2 %v1015_v5 }
  0x34   : > { %490 = vmatmul.bf16.vlgmr.msra.gmra.mxu0 %v1394_v2 }
  0x35   : > { %503 = vmatmul.bf16.vlgmr.msra.gmra.mxu1 %v1394_v2 }
  0x37   : > { %515 = vmatpush.bf16.msra.mxu2 %v1003_v8 }
  0x3a   : > { %516 = vmatmul.bf16.vlgmr.msra.gmra.mxu2 %v1394_v2 }
  0xb1   : > { %v491_v15 = vpop.f32.mrf.mxu0 }
  0xb2   : > { %v504_v16 = vpop.f32.mrf.mxu1  ;;  %v492_v17 = vadd.f32 %v491_v15, %v351_v13 }
  0xb3   : > { %v505_v18 = vadd.f32 %v504_v16, %v352_v14 }
  0xb4   : > { %v540_v20 = vpack.c.bf16 %v492_v17, %v492_v17 }
  0xb5   : > { %v541_v19 = vpack.c.bf16 %v505_v18, %v505_v18 }
  0xb6   : > { %v604_v26 = vunpack.c.l.b16 %v540_v20 }
  0xb7   : > { %v609_v21 = vunpack.c.l.b16 %v541_v19  ;;  %v548_v22 = vsel %vm543_vm0, %v541_v19, 0 }
  0xb8   : > { %557 = vmatpush.bf16.xpose.msra.mxu3 %v548_v22  ;;  %v605_v27 = vpack.c.b16 %v604_v26, %v604_v26 }
  0xb9   : > { %v610_v23 = vpack.c.b16 %v609_v21, %v609_v21  ;;  %v493_v24 = vpop.f32.mrf.mxu0 }
  0xba   : > { %v506_v25 = vpop.f32.mrf.mxu1 }
  0xbb   : > { %672 = vrot.lane.b32.xlu2 %v610_v23, %s1303_s25  ;;  %611 = vrot.lane.b32.xlu1 %v610_v23, %s1304_s26 }
  0xbd   : > { %v517_v29 = vpop.f32.mrf.mxu2 }
  0xbe   : > { %v518_v31 = vadd.f32 %v517_v29, %v353_v30 }
  0xbf   : > { %1088 = vmatmul.msk.bf16.vlgmr.msra.gmra.mxu3 %vm543_vm0, %v540_v20 }
  0xc0   : > { %v1409_v33 = vpack.c.bf16 %v518_v31, %v518_v31 }
  0xc2   : > { %v588_v34 = vsel %vm586_vm1, %v1409_v33, 0  ;;  %v647_v15 = vunpack.c.l.b16 %v1409_v33 }
  0xc3   : > { %730 = vrot.lane.b32.xlu2 %v610_v23, %s1305_s27  ;;  %606 = vrot.lane.b32.xlu1 %v605_v27, %s1304_s26 }
  0xc4   : > { %597 = vmatpush.bf16.msrb.mxu3 %v588_v34  ;;  %v648_v16 = vpack.c.b16 %v647_v15, %v647_v15 }
  0xc5   : > { %v519_v32 = vpop.f32.mrf.mxu2 }
  0xcb   : > { %728 = vrot.lane.b32.xlu1 %v605_v27, %s1305_s27 }
 0x115   : > { %v673_v35 = vpop.permute.xlu2 %672 }
 0x116   : > { %v678_v36 = vsel %vm543_vm0, %v673_v35, 0 }
 0x117   : > { %687 = vmatpush.bf16.xpose.msrb.mxu2 %v678_v36 }
 0x11d   : > { %v731_v55 = vpop.permute.xlu2 %730 }
 0x11e   : > { %v736_v57 = vsel %vm543_vm0, %v731_v55, 0 }
 0x12d   : > { %v612_v37 = vpop.permute.xlu1 %611 }
 0x12e   : > { %v617_v38 = vsel %vm543_vm0, %v612_v37, 0 }
 0x12f   : > { %626 = vmatpush.bf16.xpose.msra.mxu3 %v617_v38 }
 0x135   : > { %v607_v59 = vpop.permute.xlu1 %606 }
 0x13d   : > { %v729_v60 = vpop.permute.xlu1 %728 }
 0x142   : > { %v559_v42 = vpop.f32.mrf.mxu3 }
 0x143   : > { %v563_v43 = vmul.f32 0.17677669, %v559_v42 }
 0x145   : > { %v569_v44 = vsel %vm568_vm2, %v563_v43, -1e+30 }
 0x146   : > { %v571_v45 = vsel %vm570_vm3, %v569_v44, -inf }
 0x147   : > { %572 = vmax.xlane.f32.xlu0 %v571_v45 }
 0x14a   : > { %v561_v46 = vpop.f32.mrf.mxu3 }
 0x1ba   : > { %v573_v47 = vpop.xlane.xlu0 %572 }
 0x1bb   : > { %v574_v48 = vsub.f32 %v569_v44, %v573_v47 }
 0x1bd   : > { %v575_v49 = vmul.f32 1.442695, %v574_v48 }
 0x1bf   : > { %1201 = vpow2.f32 %v575_v49 }
 0x1c5   : > { %v1202_v50 = vpop.eup %1201 }
 0x1c6   : > { %v577_v51 = vsel %vm570_vm3, %v1202_v50, 0.0 }
 0x1c7   : > { %578 = vadd.xlane.f32.xlu0 %v577_v51 }
 0x1db   : > { %670 = vrot.lane.b32.xlu0 %v605_v27, %s1303_s25 }
 0x23a   : > { %v579_v52 = vpop.xlane.xlu0 %578 }
 0x23b   : > { %1203 = vrcp.f32 %v579_v52 }
 0x241   : > { %v1204_v53 = vpop.eup %1203 }
 0x242   : > { %v581_v54 = vmul.f32 %v1204_v53, %v1202_v50 }
 0x244   : > { %v582_v56 = vpack.c.bf16 %v581_v54, %v581_v54 }
 0x246   : > { %1089 = vmatmul.msk.bf16.vlgmr.msrb.gmra.mxu3 %vm570_vm3, %v582_v56  ;;  %v1161_v56 = vld [vmem:[#allocation4 + $0x38] sm:$0xff] }
 0x247   : > { %745 = vmatpush.bf16.xpose.msrb.mxu3 %v736_v57  ;;  %854 = vmatpush.bf16.msrb.mxu1 %v1161_v56  ;;  %v1160_v57 = vld [vmem:[#allocation4 + $0x30] sm:$0xff] }
 0x24b   : > { %855 = vmatpush.bf16.msrb.mxu1 %v1160_v57 }
 0x24d   : > { %v671_v58 = vpop.permute.xlu0 %670 }
 0x24e   : > { %1092 = vmatmul.msk.bf16.vlgmr.msrb.gmra.mxu2 %vm543_vm0, %v671_v58  ;;  %v1159_v58 = vld [vmem:[#allocation4 + $0x28] sm:$0xff] }
 0x24f   : > { %856 = vmatpush.bf16.msrb.mxu1 %v1159_v58 }
 0x256   : > { %1090 = vmatmul.msk.bf16.vlgmr.msra.gmra.mxu3 %vm543_vm0, %v607_v59  ;;  %v1158_v59 = vld [vmem:[#allocation4 + $0x20] sm:$0xff] }
 0x257   : > { %857 = vmatpush.bf16.msrb.mxu1 %v1158_v59 }
 0x266   : > { %1094 = vmatmul.msk.bf16.vlgmr.msrb.gmra.mxu3 %vm543_vm0, %v729_v60  ;;  %v1157_v60 = vld [vmem:[#allocation4 + $0x18] sm:$0xff] }
 0x267   : > { %858 = vmatpush.bf16.msrb.mxu1 %v1157_v60 }
 0x2c9   : > { %v1424_v61 = vpop.f32.mrf.mxu3 }
 0x2d1   : > { %v601_v62 = vpop.f32.mrf.mxu3  ;;  %v689_v63 = vpop.f32.mrf.mxu2 }
 0x2d2   : > { %v693_v0 = vmul.f32 0.17677669, %v689_v63  ;;  %v1156_v62 = vld [vmem:[#allocation4 + $0x10] sm:$0xff]  ;;  %v1155_v63 = vld [vmem:[#allocation4 + $0x8] sm:$0xff] }
 0x2d3   : > { %859 = vmatpush.bf16.msrb.mxu1 %v1156_v62 }
 0x2d4   : > { %v694_v1 = vsel %vm568_vm2, %v693_v0, -1e+30  ;;  %v1154_v0 = vld [vmem:[#allocation4] sm:$0xff] }
 0x2d5   : > { %v695_v3 = vsel %vm570_vm3, %v694_v1, -inf }
 0x2d6   : > { %696 = vmax.xlane.f32.xlu1 %v695_v3 }
 0x2d7   : > { %860 = vmatpush.bf16.msrb.mxu1 %v1155_v63 }
 0x2d9   : > { %v628_v4 = vpop.f32.mrf.mxu3  ;;  %v691_v5 = vpop.f32.mrf.mxu2 }
 0x2da   : > { %v632_v6 = vmul.f32 0.17677669, %v628_v4 }
 0x2db   : > { %861 = vmatpush.bf16.msrb.mxu1 %v1154_v0 }
 0x2dc   : > { %v633_v7 = vsel %vm568_vm2, %v632_v6, -1e+30 }
 0x2dd   : > { %v634_v8 = vsel %vm570_vm3, %v633_v7, -inf }
 0x2de   : > { %635 = vmax.xlane.f32.xlu2 %v634_v8 }
 0x2e1   : > { %v630_v9 = vpop.f32.mrf.mxu3 }
 0x2e2   : > { %v537_v9 = vld [vmem:[%s1472_s4] sm:$0x1] }
 0x2e9   : > { %v747_v10 = vpop.f32.mrf.mxu3 }
 0x2ea   : > { %v751_v11 = vmul.f32 0.17677669, %v747_v10  ;;  %v804_v10 = vunpack.c.l.bf16 %v537_v9 }
 0x2ec   : > { %v752_v12 = vsel %vm568_vm2, %v751_v11, -1e+30  ;;  %v805_v11 = vperm.slane %v804_v10, 0 }
 0x2ed   : > { %v753_v13 = vsel %vm570_vm3, %v752_v12, -inf }
 0x2ee   : > { %754 = vmax.xlane.f32.xlu0 %v753_v13 }
 0x2f1   : > { %v749_v14 = vpop.f32.mrf.mxu3 }
 0x302   : > { %707 = vrot.lane.b32.xlu0 %v648_v16, %s1303_s25 }
 0x349   : > { %v697_v17 = vpop.xlane.xlu1 %696 }
 0x34a   : > { %v698_v18 = vsub.f32 %v694_v1, %v697_v17  ;;  %v1306_v17 = vmov 128.0  }
 0x34c   : > { %v699_v19 = vmul.f32 1.442695, %v698_v18 }
 0x34e   : > { %1205 = vpow2.f32 %v699_v19 }
 0x351   : > { %v636_v20 = vpop.xlane.xlu2 %635 }
 0x352   : > { %v637_v21 = vsub.f32 %v633_v7, %v636_v20 }
 0x354   : > { %v1206_v22 = vpop.eup %1205  ;;  %v638_v23 = vmul.f32 1.442695, %v637_v21 }
 0x355   : > { %v701_v24 = vsel %vm570_vm3, %v1206_v22, 0.0 }
 0x356   : > { %1207 = vpow2.f32 %v638_v23  ;;  %702 = vadd.xlane.f32.xlu1 %v701_v24 }
 0x35c   : > { %v1208_v25 = vpop.eup %1207 }
 0x35d   : > { %v640_v26 = vsel %vm570_vm3, %v1208_v25, 0.0 }
 0x35e   : > { %641 = vadd.xlane.f32.xlu2 %v640_v26 }
 0x361   : > { %v755_v27 = vpop.xlane.xlu0 %754 }
 0x362   : > { %v756_v28 = vsub.f32 %v752_v12, %v755_v27  ;;  %v867_v12 = vunpack.c.l.bf16 %v1394_v2 }
 0x364   : > { %v757_v29 = vmul.f32 1.442695, %v756_v28 }
 0x366   : > { %1209 = vpow2.f32 %v757_v29 }
 0x36c   : > { %v1210_v30 = vpop.eup %1209 }
 0x36d   : > { %v759_v31 = vsel %vm570_vm3, %v1210_v30, 0.0 }
 0x36e   : > { %760 = vadd.xlane.f32.xlu1 %v759_v31 }
 0x374   : > { %v708_v32 = vpop.permute.xlu0 %707 }
 0x375   : > { %v713_v33 = vsel %vm586_vm1, %v708_v32, 0 }
 0x376   : > { %649 = vrot.lane.b32.xlu2 %v648_v16, %s1304_s26  ;;  %722 = vmatpush.bf16.msra.mxu2 %v713_v33 }
 0x387   : > { %765 = vrot.lane.b32.xlu1 %v648_v16, %s1305_s27 }
 0x3c9   : > { %v703_v34 = vpop.xlane.xlu1 %702 }
 0x3ca   : > { %1211 = vrcp.f32 %v703_v34 }
 0x3d0   : > { %v1212_v35 = vpop.eup %1211 }
 0x3d1   : > { %v705_v36 = vmul.f32 %v1212_v35, %v1206_v22  ;;  %v642_v37 = vpop.xlane.xlu2 %641  ;;  %v1199_v35 = vld [vmem:[%s1473_s5] ss:$0 sm:$0xff] }
 0x3d2   : > { %1213 = vrcp.f32 %v642_v37  ;;  %v1200_v37 = vld [vmem:[%s1474_s6] ss:$0 sm:$0xff] }
 0x3d3   : > { %v706_v38 = vpack.c.bf16 %v705_v36, %v705_v36 }
 0x3d5   : > { %1093 = vmatmul.msk.bf16.vlgmr.msra.gmra.mxu2 %vm570_vm3, %v706_v38 }
 0x3d8   : > { %v1214_v39 = vpop.eup %1213 }
 0x3d9   : > { %v644_v40 = vmul.f32 %v1214_v39, %v1208_v25  ;;  %v650_v41 = vpop.permute.xlu2 %649 }
 0x3da   : > { %v655_v42 = vsel %vm586_vm1, %v650_v41, 0 }
 0x3db   : > { %664 = vmatpush.bf16.msrb.mxu0 %v655_v42  ;;  %v645_v43 = vpack.c.bf16 %v644_v40, %v644_v40 }
 0x3de   : > { %1091 = vmatmul.msk.bf16.vlgmr.msrb.gmra.mxu0 %vm570_vm3, %v645_v43 }
 0x3e1   : > { %v761_v44 = vpop.xlane.xlu1 %760 }
 0x3e2   : > { %1215 = vrcp.f32 %v761_v44 }
 0x3e3   : > { %1217 = vrcp.f32 %v1306_v17 }
 0x3e8   : > { %v1216_v45 = vpop.eup %1215 }
 0x3e9   : > { %v763_v46 = vmul.f32 %v1216_v45, %v1210_v30 }
 0x3eb   : > { %v764_v49 = vpack.c.bf16 %v763_v46, %v763_v46 }
 0x3f9   : > { %v766_v47 = vpop.permute.xlu1 %765 }
 0x3fa   : > { %v771_v48 = vsel %vm586_vm1, %v766_v47, 0 }
 0x3fb   : > { %780 = vmatpush.bf16.msra.mxu0 %v771_v48 }
 0x3fe   : > { %1095 = vmatmul.msk.bf16.vlgmr.msra.gmra.mxu0 %vm570_vm3, %v764_v49 }
 0x458   : > { %v724_v50 = vpop.f32.mrf.mxu2 }
 0x45b   : > { %v666_v51 = vpop.f32.mrf.mxu0 }
 0x45c   : > { %787 = vrot.lane.b32.xlu2 %v666_v51, %s1305_s27 }
 0x460   : > { %v726_v52 = vpop.f32.mrf.mxu2 }
 0x463   : > { %v668_v53 = vpop.f32.mrf.mxu0 }
 0x464   : > { %791 = vrot.lane.b32.xlu2 %v724_v50, %s1303_s25 }
 0x47b   : > { %v782_v54 = vpop.f32.mrf.mxu0 }
 0x47c   : > { %795 = vrot.lane.b32.xlu0 %v782_v54, %s1304_s26 }
 0x483   : > { %v784_v55 = vpop.f32.mrf.mxu0 }
 0x4b6   : > { %v788_v1 = vpop.permute.xlu2 %787 }
 0x4b7   : > { %v798_v4 = vsel %vm543_vm0, %v1424_v61, %v788_v1  ;;  %v1218_v61 = vpop.eup %1217 }
 0x4b8   : > { %v872_v18 = vmul.f32 128.0, %v1218_v61  ;;  %vm876_vm6 = vweird.f32 %v1218_v61 }
 0x4ba   : > { %v873_v19 = vsub.f32 1.0, %v872_v18 }
 0x4bc   : > { %v874_v20 = vmul.f32 %v1218_v61, %v873_v19 }
 0x4be   : > { %v792_v3 = vpop.permute.xlu2 %791  ;;  %v875_v21 = vadd.f32 %v1218_v61, %v874_v20 }
 0x4bf   : > { %v800_v5 = vsel %vm799_vm4, %v798_v4, %v792_v3 }
 0x4c0   : > { %v877_v22 = vsel %vm876_vm6, %v1218_v61, %v875_v21 }
 0x4ee   : > { %v796_v6 = vpop.permute.xlu0 %795 }
 0x4ef   : > { %v802_v7 = vsel %vm801_vm5, %v800_v5, %v796_v6 }
 0x4f0   : > { %v803_v8 = vpack.c.bf16 %v802_v7, %v802_v7 }
 0x4f2   : > { %862 = vmatmul.bf16.vlgmr.msrb.gmra.mxu1 %v803_v8 }
 0x56f   : > { %v863_v13 = vpop.f32.mrf.mxu1 }
 0x570   : > { %v864_v14 = vadd.f32 %v863_v13, %v805_v11 }
 0x572   : > { %v868_v15 = vadd.f32 %v867_v12, %v864_v14 }
 0x574   : > { %869 = vadd.xlane.f32.xlu2 %v868_v15 }
 0x577   : > { %v865_v16 = vpop.f32.mrf.mxu1 }
 0x5e7   : > { %v870_v23 = vpop.xlane.xlu2 %869 }
 0x5e8   : > { %v878_v24 = vmul.f32 %v877_v22, %v870_v23 }
 0x5ea   : > { %v879_v25 = vsub.f32 %v868_v15, %v878_v24 }
 0x5ec   : > { %v880_v26 = vmul.f32 %v879_v25, %v879_v25 }
 0x5ee   : > { %881 = vadd.xlane.f32.xlu0 %v880_v26 }
 0x661   : > { %v882_v2 = vpop.xlane.xlu0 %881 }
 0x662   : > { %v883_v27 = vmul.f32 %v882_v2, %v877_v22 }
 0x664   : > { %v884_v28 = vadd.f32 1e-05, %v883_v27 }
 0x666   : > { %1219 = vrsqrt.f32 %v884_v28  ;;  %vm891_vm8 = vweird.f32 %v884_v28 }
 0x66c   : > { %v1220_v29 = vpop.eup %1219 }
 0x66d   : > { %v886_v30 = vmul.f32 %v1220_v29, %v884_v28  ;;  %vm892_vm7 = vweird.f32 %v1220_v29 }
 0x66e   : > { %vm893_vm9 = vmor %vm891_vm8, %vm892_vm7 }
 0x66f   : > { %v887_v31 = vmul.f32 %v1220_v29, %v886_v30 }
 0x671   : > { %v888_v32 = vmul.f32 0.5, %v887_v31 }
 0x673   : > { %v889_v33 = vsub.f32 1.5, %v888_v32 }
 0x675   : > { %v890_v34 = vmul.f32 %v1220_v29, %v889_v33 }
 0x677   : > { %v894_v36 = vsel %vm893_vm9, %v1220_v29, %v890_v34 }
 0x678   : > { %v895_v38 = vmul.f32 %v894_v36, %v879_v25 }
 0x67a   : > { %v899_v39 = vmul.f32 %v1199_v35, %v895_v38 }
 0x67c   : > { %v903_v40 = vadd.f32 %v1200_v37, %v899_v39 }
 0x67e   : > { %v904_v41 = vpack.c.bf16 %v903_v40, %v903_v40 }
 0x680   : > { %905 = vst [vmem:[%s307_s14] sm:$0xf] %v904_v41 }
 0x681 PF: > { %s19_s24 = sadd.s32 1, %s1295_s24  }
 0x682   : > { %p16_p7 = scmp.ge.s32.totalorder %s19_s24, 4  }
 0x684   :  { %18 = sbr.rel (!%p16_p7) target bundleno = 2 (0x2), region = 87 }
 0x689   :  { %925 = vsyncpa [#allocation3], 1 }
 0x68a   :  { %927 = vsyncpa [#allocation3 + $0x1], 1 }
 0x68b   :  { %928 = vsyncpa [#allocation5], 1 }

</bundles_post_ra>
